<compile_context>
chip_gen: v6e
topology: v6e:2x2x1
jax: 0.10.0
libtpu: 0.0.40
codegen_flags: <defaults>
</compile_context>

<pallas_src>
import math

import jax
import jax.numpy as jnp
from jax.experimental import pallas as pl
from jax.experimental.pallas import tpu as pltpu

# ------------------------- small deterministic config -------------------------
B = 2            # batch (per sentence side)
T = 8            # sequence length
D_MODEL = 32
N_HEADS = 4
D_HEAD = D_MODEL // N_HEADS
D_FF = 64
N_LAYERS = 2
N_WORDS = 50     # vocab
FC_DIM = 64
N_CLASSES = 3
PROJ_HEAD = 1    # config['proj_head'] == 1 -> projection_layer branch is skipped
PICK_HID = True  # config['pick_hid']
LN_EPS = 1e-6

N_GROUPS = 2         # s1 and s2 stacked along a leading group axis
ROWS = B * T         # activation rows per group (16)
V_PAD = 128          # generator vocab padded to a full lane width
C_PAD = 128          # classifier output padded to a full lane width
NEG_INF = -1e9

# TODO(synk): nn.Dropout is inference-mode identity here (no dropout applied).


# ================================ Pallas kernels ================================

def encoder_kernel(x_ref, mask_ref, pick_ref,
                   ln1_g_ref, ln1_b_ref, wqkv_ref, bqkv_ref, wo_ref, bo_ref,
                   ln2_g_ref, ln2_b_ref, w1_ref, b1_ref, w2_ref, b2_ref,
                   lnf_g_ref, lnf_b_ref, gen_w_ref, gen_b_ref,
                   picked_ref, gen_ref):
    """One grid step = one stacked group of B sentences, (ROWS, D_MODEL) rows."""

    def layer_norm(h, g, b):
        mu = jnp.mean(h, axis=-1, keepdims=True)
        var = jnp.mean((h - mu) ** 2, axis=-1, keepdims=True)
        return (h - mu) * jax.lax.rsqrt(var + LN_EPS) * g + b

    x = x_ref[0]                      # (ROWS, D_MODEL)
    amask = mask_ref[0]               # (ROWS, ROWS) additive mask (0 / -1e9),
                                      # block-diagonal over sentences + causal + length
    scale = 1.0 / math.sqrt(D_HEAD)

    for l in range(N_LAYERS):         # static unroll over layers (weights stay in VMEM)
        # ---- pre-LN + multi-head self-attention + residual ----
        xn = layer_norm(x, ln1_g_ref[l], ln1_b_ref[l])
        qkv = jnp.dot(xn, wqkv_ref[l],
                      preferred_element_type=jnp.float32) + bqkv_ref[l]   # (ROWS, 3D)
        q = qkv[:, 0 * D_MODEL:1 * D_MODEL]
        k = qkv[:, 1 * D_MODEL:2 * D_MODEL]
        v = qkv[:, 2 * D_MODEL:3 * D_MODEL]

        ctx_parts = []
        for h in range(N_HEADS):      # static unroll; each head batched over all B sentences
            sl = slice(h * D_HEAD, (h + 1) * D_HEAD)
            s = jnp.dot(q[:, sl], k[:, sl].T,
                        preferred_element_type=jnp.float32) * scale + amask
            s = s - jnp.max(s, axis=-1, keepdims=True)
            p = jnp.exp(s)
            p = p / jnp.sum(p, axis=-1, keepdims=True)
            ctx_parts.append(jnp.dot(p, v[:, sl],
                                     preferred_element_type=jnp.float32))  # (ROWS, D_HEAD)
        ctx = jnp.concatenate(ctx_parts, axis=-1)                          # (ROWS, D_MODEL)
        x = x + jnp.dot(ctx, wo_ref[l],
                        preferred_element_type=jnp.float32) + bo_ref[l]

        # ---- pre-LN + position-wise FFN + residual ----
        xn = layer_norm(x, ln2_g_ref[l], ln2_b_ref[l])
        hmid = jnp.maximum(
            jnp.dot(xn, w1_ref[l], preferred_element_type=jnp.float32) + b1_ref[l], 0.0)
        x = x + jnp.dot(hmid, w2_ref[l],
                        preferred_element_type=jnp.float32) + b2_ref[l]

    # final LayerNorm
    hfin = layer_norm(x, lnf_g_ref[...], lnf_b_ref[...])                   # (ROWS, D_MODEL)

    # pick the hidden state of the last valid token of each sentence (one-hot matmul)
    picked_ref[0] = jnp.dot(pick_ref[0], hfin,
                            preferred_element_type=jnp.float32)            # (B, D_MODEL)

    # generator: Linear(d_model, vocab padded to 128 lanes) + log_softmax
    logits = jnp.dot(hfin, gen_w_ref[...],
                     preferred_element_type=jnp.float32) + gen_b_ref[...]  # (ROWS, V_PAD)
    m = jnp.max(logits, axis=-1, keepdims=True)
    lse = jnp.log(jnp.sum(jnp.exp(logits - m), axis=-1, keepdims=True)) + m
    gen_ref[0] = logits - lse


def classifier_kernel(u_ref, v_ref, w1_ref, b1_ref, w2_ref, b2_ref, w3_ref, b3_ref, o_ref):
    """Fused feature construction + 3 stacked Linear layers (no nonlinearity)."""
    u = u_ref[...]
    v = v_ref[...]
    f = jnp.concatenate([u, v, u - v, u * v], axis=-1)                     # (B, 4*D) = (2, 128)
    h = jnp.dot(f, w1_ref[...], preferred_element_type=jnp.float32) + b1_ref[...]
    h = jnp.dot(h, w2_ref[...], preferred_element_type=jnp.float32) + b2_ref[...]
    o_ref[...] = jnp.dot(h, w3_ref[...], preferred_element_type=jnp.float32) + b3_ref[...]


# ================================ kernel wrappers ================================

def _const_spec(shape):
    """Full-array block with a constant index map (weight stays VMEM-resident)."""
    zeros = (0,) * len(shape)
    return pl.BlockSpec(shape, lambda i: zeros)


def encoder_call(x, mask, pick, p):
    in_specs = [
        pl.BlockSpec((1, ROWS, D_MODEL), lambda i: (i, 0, 0)),   # x
        pl.BlockSpec((1, ROWS, ROWS), lambda i: (i, 0, 0)),      # additive mask
        pl.BlockSpec((1, B, ROWS), lambda i: (i, 0, 0)),         # one-hot pick
        _const_spec(p["ln1_g"].shape), _const_spec(p["ln1_b"].shape),
        _const_spec(p["wqkv"].shape), _const_spec(p["bqkv"].shape),
        _const_spec(p["wo"].shape), _const_spec(p["bo"].shape),
        _const_spec(p["ln2_g"].shape), _const_spec(p["ln2_b"].shape),
        _const_spec(p["w1"].shape), _const_spec(p["b1"].shape),
        _const_spec(p["w2"].shape), _const_spec(p["b2"].shape),
        _const_spec(p["lnf_g"].shape), _const_spec(p["lnf_b"].shape),
        _const_spec(p["gen_w"].shape), _const_spec(p["gen_b"].shape),
    ]
    out_specs = [
        pl.BlockSpec((1, B, D_MODEL), lambda i: (i, 0, 0)),      # picked hidden states
        pl.BlockSpec((1, ROWS, V_PAD), lambda i: (i, 0, 0)),     # generator log-probs (lane-dense)
    ]
    out_shape = [
        jax.ShapeDtypeStruct((N_GROUPS, B, D_MODEL), jnp.float32),
        jax.ShapeDtypeStruct((N_GROUPS, ROWS, V_PAD), jnp.float32),
    ]
    return pl.pallas_call(
        encoder_kernel,
        grid=(N_GROUPS,),
        in_specs=in_specs,
        out_specs=out_specs,
        out_shape=out_shape,
        compiler_params=pltpu.CompilerParams(dimension_semantics=("parallel",)),
    )(x, mask, pick,
      p["ln1_g"], p["ln1_b"], p["wqkv"], p["bqkv"], p["wo"], p["bo"],
      p["ln2_g"], p["ln2_b"], p["w1"], p["b1"], p["w2"], p["b2"],
      p["lnf_g"], p["lnf_b"], p["gen_w"], p["gen_b"])


def classifier_call(u, v, p):
    return pl.pallas_call(
        classifier_kernel,
        out_shape=jax.ShapeDtypeStruct((B, C_PAD), jnp.float32),
    )(u, v, p["c1_w"], p["c1_b"], p["c2_w"], p["c2_b"], p["c3_w"], p["c3_b"])


# ================================ model glue ================================

def positional_encoding(max_len, d_model):
    pos = jnp.arange(max_len, dtype=jnp.float32)[:, None]
    div = jnp.exp(jnp.arange(0, d_model, 2, dtype=jnp.float32)
                  * (-math.log(10000.0) / d_model))
    pe = jnp.zeros((max_len, d_model), jnp.float32)
    pe = pe.at[:, 0::2].set(jnp.sin(pos * div))
    pe = pe.at[:, 1::2].set(jnp.cos(pos * div))
    return pe


def init_params(key):
    keys = jax.random.split(key, 16)

    def nrm(k, shape, scale=0.05):
        return jax.random.normal(k, shape, jnp.float32) * scale

    # generator weights padded to 128 lanes; padded columns get -1e30 bias so
    # they contribute nothing to the log_softmax normalizer.
    gen_w = jnp.zeros((D_MODEL, V_PAD), jnp.float32)
    gen_w = gen_w.at[:, :N_WORDS].set(nrm(keys[5], (D_MODEL, N_WORDS)))
    gen_b = jnp.full((1, V_PAD), -1e30, jnp.float32)
    gen_b = gen_b.at[:, :N_WORDS].set(0.0)

    # classifier head padded to 128 lanes (zero columns; sliced back on host).
    c3_w = jnp.zeros((FC_DIM, C_PAD), jnp.float32)
    c3_w = c3_w.at[:, :N_CLASSES].set(nrm(keys[8], (FC_DIM, N_CLASSES)))
    c3_b = jnp.zeros((1, C_PAD), jnp.float32)

    return {
        "emb": nrm(keys[0], (N_WORDS, D_MODEL), 0.1),
        "pe": positional_encoding(T, D_MODEL),
        # per-layer weights stacked along a leading layer axis
        "ln1_g": jnp.ones((N_LAYERS, 1, D_MODEL), jnp.float32),
        "ln1_b": jnp.zeros((N_LAYERS, 1, D_MODEL), jnp.float32),
        "wqkv": nrm(keys[1], (N_LAYERS, D_MODEL, 3 * D_MODEL)),   # fused Wq|Wk|Wv
        "bqkv": jnp.zeros((N_LAYERS, 1, 3 * D_MODEL), jnp.float32),
        "wo": nrm(keys[2], (N_LAYERS, D_MODEL, D_MODEL)),
        "bo": jnp.zeros((N_LAYERS, 1, D_MODEL), jnp.float32),
        "ln2_g": jnp.ones((N_LAYERS, 1, D_MODEL), jnp.float32),
        "ln2_b": jnp.zeros((N_LAYERS, 1, D_MODEL), jnp.float32),
        "w1": nrm(keys[3], (N_LAYERS, D_MODEL, D_FF)),
        "b1": jnp.zeros((N_LAYERS, 1, D_FF), jnp.float32),
        "w2": nrm(keys[4], (N_LAYERS, D_FF, D_MODEL)),
        "b2": jnp.zeros((N_LAYERS, 1, D_MODEL), jnp.float32),
        "lnf_g": jnp.ones((1, D_MODEL), jnp.float32),
        "lnf_b": jnp.zeros((1, D_MODEL), jnp.float32),
        "gen_w": gen_w, "gen_b": gen_b,
        # classifier: Linear(d_model*proj_head*4, fc) -> Linear(fc, fc) -> Linear(fc, n_classes)
        "c1_w": nrm(keys[6], (D_MODEL * PROJ_HEAD * 4, FC_DIM)),
        "c1_b": jnp.zeros((1, FC_DIM), jnp.float32),
        "c2_w": nrm(keys[7], (FC_DIM, FC_DIM)),
        "c2_b": jnp.zeros((1, FC_DIM), jnp.float32),
        "c3_w": c3_w, "c3_b": c3_b,
    }


def make_mask_and_pick(lengths, pick_lengths):
    """lengths: (N_GROUPS*B,) int32.

    Returns:
      mask: (N_GROUPS, ROWS, ROWS) additive attention mask, block-diagonal over
            sentences within a group, causal + key-length masked inside blocks.
      pick: (N_GROUPS, B, ROWS) one-hot selector of the last picked token row.
    """
    pos = jnp.arange(T)
    causal = pos[:, None] >= pos[None, :]                              # (T, T)
    key_valid = pos[None, None, :] < lengths[:, None, None]            # (G*B, 1, T)
    keep = jnp.logical_and(causal[None, :, :], key_valid)              # (G*B, T, T)
    add = jnp.where(keep, 0.0, NEG_INF).astype(jnp.float32)
    per = add.reshape(N_GROUPS, B, T, T)
    big = jnp.full((N_GROUPS, B, B, T, T), NEG_INF, jnp.float32)
    bidx = jnp.arange(B)
    big = big.at[:, bidx, bidx].set(per)                               # diagonal blocks
    mask = big.transpose(0, 1, 3, 2, 4).reshape(N_GROUPS, ROWS, ROWS)

    lens2 = pick_lengths.reshape(N_GROUPS, B)
    cols = jnp.arange(B)[None, :] * T + (lens2 - 1)                    # (G, B) row indices
    pick = jnp.zeros((N_GROUPS, B, ROWS), jnp.float32)
    pick = pick.at[jnp.arange(N_GROUPS)[:, None],
                   jnp.arange(B)[None, :], cols].set(1.0)
    return mask, pick


def dissent_forward(s1, s1_lengths, s2, s2_lengths, params, lm=True):
    # stack s1 and s2 so the whole encoder runs once on a (2B, T) batch
    tokens = jnp.concatenate([s1, s2], axis=0)                         # (2B, T)
    lengths = jnp.concatenate([s1_lengths, s2_lengths], axis=0)        # (2B,)

    # tgt_embed: embedding * sqrt(d_model) + positional encoding (dropout = identity, eval)
    x = params["emb"][tokens] * math.sqrt(D_MODEL) + params["pe"][None, :T, :]
    x = x.astype(jnp.float32).reshape(N_GROUPS, ROWS, D_MODEL)

    pick_lengths = lengths if PICK_HID else jnp.full_like(lengths, T)
    mask, pick = make_mask_and_pick(lengths, pick_lengths)

    picked, gen = encoder_call(x, mask, pick, params)                  # (G,B,D), (G,ROWS,V_PAD)
    picked = picked.reshape(N_GROUPS * B, D_MODEL)
    u, v = picked[:B], picked[B:]
    # (PROJ_HEAD == 1 -> projection_layer branch not taken)

    clf_output = classifier_call(u, v, params)[:, :N_CLASSES]          # (B, n_classes)

    if lm:
        gen = gen.reshape(N_GROUPS, B, T, V_PAD)[..., :N_WORDS]        # strip lane padding
        return clf_output, gen[0], gen[1]
    return clf_output


# ================================ main ================================

if __name__ == "__main__":
    key = jax.random.PRNGKey(0)
    k_param, k_s1, k_s2 = jax.random.split(key, 3)

    params = init_params(k_param)

    s1_lengths = jnp.array([8, 5], dtype=jnp.int32)
    s2_lengths = jnp.array([6, 8], dtype=jnp.int32)

    pos = jnp.arange(T)[None, :]
    s1 = jax.random.randint(k_s1, (B, T), 1, N_WORDS, dtype=jnp.int32)
    s2 = jax.random.randint(k_s2, (B, T), 1, N_WORDS, dtype=jnp.int32)
    s1 = jnp.where(pos < s1_lengths[:, None], s1, 0)                   # pad id = 0
    s2 = jnp.where(pos < s2_lengths[:, None], s2, 0)

    fwd = jax.jit(dissent_forward, static_argnames=("lm",))
    clf_output, s1_y, s2_y = fwd(s1, s1_lengths, s2, s2_lengths, params, lm=True)
    jax.block_until_ready((clf_output, s1_y, s2_y))

    assert clf_output.shape == (B, N_CLASSES)
    assert s1_y.shape == (B, T, N_WORDS) and s2_y.shape == (B, T, N_WORDS)
    assert bool(jnp.all(jnp.isfinite(clf_output)))
    assert bool(jnp.all(jnp.isfinite(s1_y))) and bool(jnp.all(jnp.isfinite(s2_y)))
    print("KERNEL_OK")
</pallas_src>

<mosaic_0001>
module attributes {stable_mosaic.version = 11 : i64} {
  func.func @classifier_kernel(%arg0: memref<2x32xf32, #tpu.memory_space<vmem>>, %arg1: memref<2x32xf32, #tpu.memory_space<vmem>>, %arg2: memref<128x64xf32, #tpu.memory_space<vmem>>, %arg3: memref<1x64xf32, #tpu.memory_space<vmem>>, %arg4: memref<64x64xf32, #tpu.memory_space<vmem>>, %arg5: memref<1x64xf32, #tpu.memory_space<vmem>>, %arg6: memref<64x128xf32, #tpu.memory_space<vmem>>, %arg7: memref<1x128xf32, #tpu.memory_space<vmem>>, %arg8: memref<2x128xf32, #tpu.memory_space<vmem>>) attributes {dimension_semantics = [], scalar_prefetch = 0 : i64, scratch_operands = 0 : i64, tpu.core_type = #tpu.core_type<tc>} {
    %c0 = arith.constant 0 : index
    %c0_0 = arith.constant 0 : index
    %0 = vector.load %arg0[%c0, %c0_0] : memref<2x32xf32, #tpu.memory_space<vmem>>, vector<2x32xf32>
    %c0_1 = arith.constant 0 : index
    %c0_2 = arith.constant 0 : index
    %1 = vector.load %arg1[%c0_1, %c0_2] : memref<2x32xf32, #tpu.memory_space<vmem>>, vector<2x32xf32>
    %2 = arith.subf %0, %1 : vector<2x32xf32>
    %3 = arith.mulf %0, %1 : vector<2x32xf32>
    %4 = tpu.concatenate %0, %1, %2, %3 in 1 : vector<2x32xf32>, vector<2x32xf32>, vector<2x32xf32>, vector<2x32xf32> -> vector<2x128xf32>
    %c0_3 = arith.constant 0 : index
    %c0_4 = arith.constant 0 : index
    %5 = vector.load %arg2[%c0_3, %c0_4] : memref<128x64xf32, #tpu.memory_space<vmem>>, vector<128x64xf32>
    %cst = arith.constant dense<0.000000e+00> : vector<2x64xf32>
    %6 = tpu.matmul %4, %5, %cst {dimension_numbers = #tpu.dot_dimension_numbers<[1], [0], [0], [1], [0, 0, 1, 1], [], []>} : vector<2x128xf32>, vector<128x64xf32>, vector<2x64xf32> -> vector<2x64xf32>
    %c0_5 = arith.constant 0 : index
    %c0_6 = arith.constant 0 : index
    %7 = vector.load %arg3[%c0_5, %c0_6] : memref<1x64xf32, #tpu.memory_space<vmem>>, vector<1x64xf32>
    %8 = vector.broadcast %7 : vector<1x64xf32> to vector<2x64xf32>
    %9 = arith.addf %6, %8 : vector<2x64xf32>
    %c0_7 = arith.constant 0 : index
    %c0_8 = arith.constant 0 : index
    %10 = vector.load %arg4[%c0_7, %c0_8] : memref<64x64xf32, #tpu.memory_space<vmem>>, vector<64x64xf32>
    %cst_9 = arith.constant dense<0.000000e+00> : vector<2x64xf32>
    %11 = tpu.matmul %9, %10, %cst_9 {dimension_numbers = #tpu.dot_dimension_numbers<[1], [0], [0], [1], [0, 0, 1, 1], [], []>} : vector<2x64xf32>, vector<64x64xf32>, vector<2x64xf32> -> vector<2x64xf32>
    %c0_10 = arith.constant 0 : index
    %c0_11 = arith.constant 0 : index
    %12 = vector.load %arg5[%c0_10, %c0_11] : memref<1x64xf32, #tpu.memory_space<vmem>>, vector<1x64xf32>
    %13 = vector.broadcast %12 : vector<1x64xf32> to vector<2x64xf32>
    %14 = arith.addf %11, %13 : vector<2x64xf32>
    %c0_12 = arith.constant 0 : index
    %c0_13 = arith.constant 0 : index
    %15 = vector.load %arg6[%c0_12, %c0_13] : memref<64x128xf32, #tpu.memory_space<vmem>>, vector<64x128xf32>
    %cst_14 = arith.constant dense<0.000000e+00> : vector<2x128xf32>
    %16 = tpu.matmul %14, %15, %cst_14 {dimension_numbers = #tpu.dot_dimension_numbers<[1], [0], [0], [1], [0, 0, 1, 1], [], []>} : vector<2x64xf32>, vector<64x128xf32>, vector<2x128xf32> -> vector<2x128xf32>
    %c0_15 = arith.constant 0 : index
    %c0_16 = arith.constant 0 : index
    %17 = vector.load %arg7[%c0_15, %c0_16] : memref<1x128xf32, #tpu.memory_space<vmem>>, vector<1x128xf32>
    %18 = vector.broadcast %17 : vector<1x128xf32> to vector<2x128xf32>
    %19 = arith.addf %16, %18 : vector<2x128xf32>
    %c0_17 = arith.constant 0 : index
    %c0_18 = arith.constant 0 : index
    %20 = vector.load %arg8[%c0_17, %c0_18] : memref<2x128xf32, #tpu.memory_space<vmem>>, vector<2x128xf32>
    tpu.vector_store %arg8[%c0_17, %c0_18], %19 {strides = array<i32>} : memref<2x128xf32, #tpu.memory_space<vmem>>, vector<2x128xf32>,
    return
  }
}

module attributes {stable_mosaic.version = 11 : i64} {
  func.func @encoder_kernel(%arg0: i32, %arg1: memref<1x16x32xf32, #tpu.memory_space<vmem>>, %arg2: memref<1x16x16xf32, #tpu.memory_space<vmem>>, %arg3: memref<1x2x16xf32, #tpu.memory_space<vmem>>, %arg4: memref<2x1x32xf32, #tpu.memory_space<vmem>>, %arg5: memref<2x1x32xf32, #tpu.memory_space<vmem>>, %arg6: memref<2x32x96xf32, #tpu.memory_space<vmem>>, %arg7: memref<2x1x96xf32, #tpu.memory_space<vmem>>, %arg8: memref<2x32x32xf32, #tpu.memory_space<vmem>>, %arg9: memref<2x1x32xf32, #tpu.memory_space<vmem>>, %arg10: memref<2x1x32xf32, #tpu.memory_space<vmem>>, %arg11: memref<2x1x32xf32, #tpu.memory_space<vmem>>, %arg12: memref<2x32x64xf32, #tpu.memory_space<vmem>>, %arg13: memref<2x1x64xf32, #tpu.memory_space<vmem>>, %arg14: memref<2x64x32xf32, #tpu.memory_space<vmem>>, %arg15: memref<2x1x32xf32, #tpu.memory_space<vmem>>, %arg16: memref<1x32xf32, #tpu.memory_space<vmem>>, %arg17: memref<1x32xf32, #tpu.memory_space<vmem>>, %arg18: memref<32x128xf32, #tpu.memory_space<vmem>>, %arg19: memref<1x128xf32, #tpu.memory_space<vmem>>, %arg20: memref<1x2x32xf32, #tpu.memory_space<vmem>>, %arg21: memref<1x16x128xf32, #tpu.memory_space<vmem>>) attributes {dimension_semantics = [#tpu.dimension_semantics<parallel>], iteration_bounds = array<i64: 2>, scalar_prefetch = 0 : i64, scratch_operands = 0 : i64, tpu.core_type = #tpu.core_type<tc>, window_params = [{transform_indices = @transform_0, window_bounds = array<i64: 1, 16, 32>}, {transform_indices = @transform_1, window_bounds = array<i64: 1, 16, 16>}, {transform_indices = @transform_2, window_bounds = array<i64: 1, 2, 16>}, {pipeline_mode = #tpu.pipeline_mode<synchronous>, transform_indices = @transform_3, window_bounds = array<i64: 2, 1, 32>}, {pipeline_mode = #tpu.pipeline_mode<synchronous>, transform_indices = @transform_4, window_bounds = array<i64: 2, 1, 32>}, {pipeline_mode = #tpu.pipeline_mode<synchronous>, transform_indices = @transform_5, window_bounds = array<i64: 2, 32, 96>}, {pipeline_mode = #tpu.pipeline_mode<synchronous>, transform_indices = @transform_6, window_bounds = array<i64: 2, 1, 96>}, {pipeline_mode = #tpu.pipeline_mode<synchronous>, transform_indices = @transform_7, window_bounds = array<i64: 2, 32, 32>}, {pipeline_mode = #tpu.pipeline_mode<synchronous>, transform_indices = @transform_8, window_bounds = array<i64: 2, 1, 32>}, {pipeline_mode = #tpu.pipeline_mode<synchronous>, transform_indices = @transform_9, window_bounds = array<i64: 2, 1, 32>}, {pipeline_mode = #tpu.pipeline_mode<synchronous>, transform_indices = @transform_10, window_bounds = array<i64: 2, 1, 32>}, {pipeline_mode = #tpu.pipeline_mode<synchronous>, transform_indices = @transform_11, window_bounds = array<i64: 2, 32, 64>}, {pipeline_mode = #tpu.pipeline_mode<synchronous>, transform_indices = @transform_12, window_bounds = array<i64: 2, 1, 64>}, {pipeline_mode = #tpu.pipeline_mode<synchronous>, transform_indices = @transform_13, window_bounds = array<i64: 2, 64, 32>}, {pipeline_mode = #tpu.pipeline_mode<synchronous>, transform_indices = @transform_14, window_bounds = array<i64: 2, 1, 32>}, {pipeline_mode = #tpu.pipeline_mode<synchronous>, transform_indices = @transform_15, window_bounds = array<i64: 1, 32>}, {pipeline_mode = #tpu.pipeline_mode<synchronous>, transform_indices = @transform_16, window_bounds = array<i64: 1, 32>}, {pipeline_mode = #tpu.pipeline_mode<synchronous>, transform_indices = @transform_17, window_bounds = array<i64: 32, 128>}, {pipeline_mode = #tpu.pipeline_mode<synchronous>, transform_indices = @transform_18, window_bounds = array<i64: 1, 128>}, {transform_indices = @transform_19, window_bounds = array<i64: 1, 2, 32>}, {transform_indices = @transform_20, window_bounds = array<i64: 1, 16, 128>}]} {
    %c0 = arith.constant 0 : index
    %c0_0 = arith.constant 0 : index
    %c0_1 = arith.constant 0 : index
    %0 = vector.load %arg1[%c0, %c0_0, %c0_1] : memref<1x16x32xf32, #tpu.memory_space<vmem>>, vector<1x16x32xf32>
    %1 = vector.shape_cast %0 : vector<1x16x32xf32> to vector<16x32xf32>
    %c0_2 = arith.constant 0 : index
    %c0_3 = arith.constant 0 : index
    %c0_4 = arith.constant 0 : index
    %2 = vector.load %arg2[%c0_2, %c0_3, %c0_4] : memref<1x16x16xf32, #tpu.memory_space<vmem>>, vector<1x16x16xf32>
    %3 = vector.shape_cast %2 : vector<1x16x16xf32> to vector<16x16xf32>
    %c0_5 = arith.constant 0 : index
    %c0_6 = arith.constant 0 : index
    %c0_7 = arith.constant 0 : index
    %4 = vector.load %arg4[%c0_5, %c0_6, %c0_7] : memref<2x1x32xf32, #tpu.memory_space<vmem>>, vector<1x1x32xf32>
    %5 = vector.shape_cast %4 : vector<1x1x32xf32> to vector<1x32xf32>
    %c0_8 = arith.constant 0 : index
    %c0_9 = arith.constant 0 : index
    %c0_10 = arith.constant 0 : index
    %6 = vector.load %arg5[%c0_8, %c0_9, %c0_10] : memref<2x1x32xf32, #tpu.memory_space<vmem>>, vector<1x1x32xf32>
    %7 = vector.shape_cast %6 : vector<1x1x32xf32> to vector<1x32xf32>
    %cst = arith.constant dense<0.000000e+00> : vector<16xf32>
    %8 = vector.multi_reduction <add>, %1, %cst [1] : vector<16x32xf32> to vector<16xf32>
    %9 = vector.shape_cast %8 : vector<16xf32> to vector<16x1xf32>
    %cst_11 = arith.constant 3.200000e+01 : f32
    %10 = vector.broadcast %cst_11 : f32 to vector<16x1xf32>
    %11 = arith.divf %9, %10 : vector<16x1xf32>
    %12 = vector.broadcast %11 : vector<16x1xf32> to vector<16x32xf32>
    %13 = arith.subf %1, %12 : vector<16x32xf32>
    %14 = arith.mulf %13, %13 : vector<16x32xf32>
    %cst_12 = arith.constant dense<0.000000e+00> : vector<16xf32>
    %15 = vector.multi_reduction <add>, %14, %cst_12 [1] : vector<16x32xf32> to vector<16xf32>
    %16 = vector.shape_cast %15 : vector<16xf32> to vector<16x1xf32>
    %cst_13 = arith.constant 3.200000e+01 : f32
    %17 = vector.broadcast %cst_13 : f32 to vector<16x1xf32>
    %18 = arith.divf %16, %17 : vector<16x1xf32>
    %19 = vector.broadcast %11 : vector<16x1xf32> to vector<16x32xf32>
    %20 = arith.subf %1, %19 : vector<16x32xf32>
    %cst_14 = arith.constant 9.99999997E-7 : f32
    %21 = vector.broadcast %cst_14 : f32 to vector<16x1xf32>
    %22 = arith.addf %18, %21 : vector<16x1xf32>
    %23 = math.rsqrt %22 : vector<16x1xf32>
    %24 = vector.broadcast %23 : vector<16x1xf32> to vector<16x32xf32>
    %25 = arith.mulf %20, %24 : vector<16x32xf32>
    %26 = vector.broadcast %5 : vector<1x32xf32> to vector<16x32xf32>
    %27 = arith.mulf %25, %26 : vector<16x32xf32>
    %28 = vector.broadcast %7 : vector<1x32xf32> to vector<16x32xf32>
    %29 = arith.addf %27, %28 : vector<16x32xf32>
    %c0_15 = arith.constant 0 : index
    %c0_16 = arith.constant 0 : index
    %c0_17 = arith.constant 0 : index
    %30 = vector.load %arg6[%c0_15, %c0_16, %c0_17] : memref<2x32x96xf32, #tpu.memory_space<vmem>>, vector<1x32x96xf32>
    %31 = vector.shape_cast %30 : vector<1x32x96xf32> to vector<32x96xf32>
    %cst_18 = arith.constant dense<0.000000e+00> : vector<16x96xf32>
    %32 = tpu.matmul %29, %31, %cst_18 {dimension_numbers = #tpu.dot_dimension_numbers<[1], [0], [0], [1], [0, 0, 1, 1], [], []>} : vector<16x32xf32>, vector<32x96xf32>, vector<16x96xf32> -> vector<16x96xf32>
    %c0_19 = arith.constant 0 : index
    %c0_20 = arith.constant 0 : index
    %c0_21 = arith.constant 0 : index
    %33 = vector.load %arg7[%c0_19, %c0_20, %c0_21] : memref<2x1x96xf32, #tpu.memory_space<vmem>>, vector<1x1x96xf32>
    %34 = vector.shape_cast %33 : vector<1x1x96xf32> to vector<1x96xf32>
    %35 = vector.broadcast %34 : vector<1x96xf32> to vector<16x96xf32>
    %36 = arith.addf %32, %35 : vector<16x96xf32>
    %37 = vector.extract_strided_slice %36 {offsets = [0, 0], sizes = [16, 32], strides = [1, 1]} : vector<16x96xf32> to vector<16x32xf32>
    %38 = vector.extract_strided_slice %36 {offsets = [0, 32], sizes = [16, 32], strides = [1, 1]} : vector<16x96xf32> to vector<16x32xf32>
    %39 = vector.extract_strided_slice %36 {offsets = [0, 64], sizes = [16, 32], strides = [1, 1]} : vector<16x96xf32> to vector<16x32xf32>
    %40 = vector.extract_strided_slice %37 {offsets = [0, 0], sizes = [16, 8], strides = [1, 1]} : vector<16x32xf32> to vector<16x8xf32>
    %41 = vector.extract_strided_slice %38 {offsets = [0, 0], sizes = [16, 8], strides = [1, 1]} : vector<16x32xf32> to vector<16x8xf32>
    %42 = tpu.transpose %41, [1, 0] : vector<16x8xf32> -> vector<8x16xf32>
    %cst_22 = arith.constant dense<0.000000e+00> : vector<16x16xf32>
    %43 = tpu.matmul %40, %42, %cst_22 {dimension_numbers = #tpu.dot_dimension_numbers<[1], [0], [0], [1], [0, 0, 1, 1], [], []>} : vector<16x8xf32>, vector<8x16xf32>, vector<16x16xf32> -> vector<16x16xf32>
    %cst_23 = arith.constant 0.353553385 : f32
    %44 = vector.broadcast %cst_23 : f32 to vector<16x16xf32>
    %45 = arith.mulf %43, %44 : vector<16x16xf32>
    %46 = arith.addf %45, %3 : vector<16x16xf32>
    %cst_24 = arith.constant dense<0xFF800000> : vector<16xf32>
    %47 = vector.multi_reduction <maximumf>, %46, %cst_24 [1] : vector<16x16xf32> to vector<16xf32>
    %48 = vector.shape_cast %47 : vector<16xf32> to vector<16x1xf32>
    %49 = vector.broadcast %48 : vector<16x1xf32> to vector<16x16xf32>
    %50 = arith.subf %46, %49 : vector<16x16xf32>
    %51 = math.exp %50 : vector<16x16xf32>
    %cst_25 = arith.constant dense<0.000000e+00> : vector<16xf32>
    %52 = vector.multi_reduction <add>, %51, %cst_25 [1] : vector<16x16xf32> to vector<16xf32>
    %53 = vector.shape_cast %52 : vector<16xf32> to vector<16x1xf32>
    %54 = vector.broadcast %53 : vector<16x1xf32> to vector<16x16xf32>
    %55 = arith.divf %51, %54 : vector<16x16xf32>
    %56 = vector.extract_strided_slice %39 {offsets = [0, 0], sizes = [16, 8], strides = [1, 1]} : vector<16x32xf32> to vector<16x8xf32>
    %cst_26 = arith.constant dense<0.000000e+00> : vector<16x8xf32>
    %57 = tpu.matmul %55, %56, %cst_26 {dimension_numbers = #tpu.dot_dimension_numbers<[1], [0], [0], [1], [0, 0, 1, 1], [], []>} : vector<16x16xf32>, vector<16x8xf32>, vector<16x8xf32> -> vector<16x8xf32>
    %58 = vector.extract_strided_slice %37 {offsets = [0, 8], sizes = [16, 8], strides = [1, 1]} : vector<16x32xf32> to vector<16x8xf32>
    %59 = vector.extract_strided_slice %38 {offsets = [0, 8], sizes = [16, 8], strides = [1, 1]} : vector<16x32xf32> to vector<16x8xf32>
    %60 = tpu.transpose %59, [1, 0] : vector<16x8xf32> -> vector<8x16xf32>
    %cst_27 = arith.constant dense<0.000000e+00> : vector<16x16xf32>
    %61 = tpu.matmul %58, %60, %cst_27 {dimension_numbers = #tpu.dot_dimension_numbers<[1], [0], [0], [1], [0, 0, 1, 1], [], []>} : vector<16x8xf32>, vector<8x16xf32>, vector<16x16xf32> -> vector<16x16xf32>
    %cst_28 = arith.constant 0.353553385 : f32
    %62 = vector.broadcast %cst_28 : f32 to vector<16x16xf32>
    %63 = arith.mulf %61, %62 : vector<16x16xf32>
    %64 = arith.addf %63, %3 : vector<16x16xf32>
    %cst_29 = arith.constant dense<0xFF800000> : vector<16xf32>
    %65 = vector.multi_reduction <maximumf>, %64, %cst_29 [1] : vector<16x16xf32> to vector<16xf32>
    %66 = vector.shape_cast %65 : vector<16xf32> to vector<16x1xf32>
    %67 = vector.broadcast %66 : vector<16x1xf32> to vector<16x16xf32>
    %68 = arith.subf %64, %67 : vector<16x16xf32>
    %69 = math.exp %68 : vector<16x16xf32>
    %cst_30 = arith.constant dense<0.000000e+00> : vector<16xf32>
    %70 = vector.multi_reduction <add>, %69, %cst_30 [1] : vector<16x16xf32> to vector<16xf32>
    %71 = vector.shape_cast %70 : vector<16xf32> to vector<16x1xf32>
    %72 = vector.broadcast %71 : vector<16x1xf32> to vector<16x16xf32>
    %73 = arith.divf %69, %72 : vector<16x16xf32>
    %74 = vector.extract_strided_slice %39 {offsets = [0, 8], sizes = [16, 8], strides = [1, 1]} : vector<16x32xf32> to vector<16x8xf32>
    %cst_31 = arith.constant dense<0.000000e+00> : vector<16x8xf32>
    %75 = tpu.matmul %73, %74, %cst_31 {dimension_numbers = #tpu.dot_dimension_numbers<[1], [0], [0], [1], [0, 0, 1, 1], [], []>} : vector<16x16xf32>, vector<16x8xf32>, vector<16x8xf32> -> vector<16x8xf32>
    %76 = vector.extract_strided_slice %37 {offsets = [0, 16], sizes = [16, 8], strides = [1, 1]} : vector<16x32xf32> to vector<16x8xf32>
    %77 = vector.extract_strided_slice %38 {offsets = [0, 16], sizes = [16, 8], strides = [1, 1]} : vector<16x32xf32> to vector<16x8xf32>
    %78 = tpu.transpose %77, [1, 0] : vector<16x8xf32> -> vector<8x16xf32>
    %cst_32 = arith.constant dense<0.000000e+00> : vector<16x16xf32>
    %79 = tpu.matmul %76, %78, %cst_32 {dimension_numbers = #tpu.dot_dimension_numbers<[1], [0], [0], [1], [0, 0, 1, 1], [], []>} : vector<16x8xf32>, vector<8x16xf32>, vector<16x16xf32> -> vector<16x16xf32>
    %cst_33 = arith.constant 0.353553385 : f32
    %80 = vector.broadcast %cst_33 : f32 to vector<16x16xf32>
    %81 = arith.mulf %79, %80 : vector<16x16xf32>
    %82 = arith.addf %81, %3 : vector<16x16xf32>
    %cst_34 = arith.constant dense<0xFF800000> : vector<16xf32>
    %83 = vector.multi_reduction <maximumf>, %82, %cst_34 [1] : vector<16x16xf32> to vector<16xf32>
    %84 = vector.shape_cast %83 : vector<16xf32> to vector<16x1xf32>
    %85 = vector.broadcast %84 : vector<16x1xf32> to vector<16x16xf32>
    %86 = arith.subf %82, %85 : vector<16x16xf32>
    %87 = math.exp %86 : vector<16x16xf32>
    %cst_35 = arith.constant dense<0.000000e+00> : vector<16xf32>
    %88 = vector.multi_reduction <add>, %87, %cst_35 [1] : vector<16x16xf32> to vector<16xf32>
    %89 = vector.shape_cast %88 : vector<16xf32> to vector<16x1xf32>
    %90 = vector.broadcast %89 : vector<16x1xf32> to vector<16x16xf32>
    %91 = arith.divf %87, %90 : vector<16x16xf32>
    %92 = vector.extract_strided_slice %39 {offsets = [0, 16], sizes = [16, 8], strides = [1, 1]} : vector<16x32xf32> to vector<16x8xf32>
    %cst_36 = arith.constant dense<0.000000e+00> : vector<16x8xf32>
    %93 = tpu.matmul %91, %92, %cst_36 {dimension_numbers = #tpu.dot_dimension_numbers<[1], [0], [0], [1], [0, 0, 1, 1], [], []>} : vector<16x16xf32>, vector<16x8xf32>, vector<16x8xf32> -> vector<16x8xf32>
    %94 = vector.extract_strided_slice %37 {offsets = [0, 24], sizes = [16, 8], strides = [1, 1]} : vector<16x32xf32> to vector<16x8xf32>
    %95 = vector.extract_strided_slice %38 {offsets = [0, 24], sizes = [16, 8], strides = [1, 1]} : vector<16x32xf32> to vector<16x8xf32>
    %96 = tpu.transpose %95, [1, 0] : vector<16x8xf32> -> vector<8x16xf32>
    %cst_37 = arith.constant dense<0.000000e+00> : vector<16x16xf32>
    %97 = tpu.matmul %94, %96, %cst_37 {dimension_numbers = #tpu.dot_dimension_numbers<[1], [0], [0], [1], [0, 0, 1, 1], [], []>} : vector<16x8xf32>, vector<8x16xf32>, vector<16x16xf32> -> vector<16x16xf32>
    %cst_38 = arith.constant 0.353553385 : f32
    %98 = vector.broadcast %cst_38 : f32 to vector<16x16xf32>
    %99 = arith.mulf %97, %98 : vector<16x16xf32>
    %100 = arith.addf %99, %3 : vector<16x16xf32>
    %cst_39 = arith.constant dense<0xFF800000> : vector<16xf32>
    %101 = vector.multi_reduction <maximumf>, %100, %cst_39 [1] : vector<16x16xf32> to vector<16xf32>
    %102 = vector.shape_cast %101 : vector<16xf32> to vector<16x1xf32>
    %103 = vector.broadcast %102 : vector<16x1xf32> to vector<16x16xf32>
    %104 = arith.subf %100, %103 : vector<16x16xf32>
    %105 = math.exp %104 : vector<16x16xf32>
    %cst_40 = arith.constant dense<0.000000e+00> : vector<16xf32>
    %106 = vector.multi_reduction <add>, %105, %cst_40 [1] : vector<16x16xf32> to vector<16xf32>
    %107 = vector.shape_cast %106 : vector<16xf32> to vector<16x1xf32>
    %108 = vector.broadcast %107 : vector<16x1xf32> to vector<16x16xf32>
    %109 = arith.divf %105, %108 : vector<16x16xf32>
    %110 = vector.extract_strided_slice %39 {offsets = [0, 24], sizes = [16, 8], strides = [1, 1]} : vector<16x32xf32> to vector<16x8xf32>
    %cst_41 = arith.constant dense<0.000000e+00> : vector<16x8xf32>
    %111 = tpu.matmul %109, %110, %cst_41 {dimension_numbers = #tpu.dot_dimension_numbers<[1], [0], [0], [1], [0, 0, 1, 1], [], []>} : vector<16x16xf32>, vector<16x8xf32>, vector<16x8xf32> -> vector<16x8xf32>
    %112 = tpu.concatenate %57, %75, %93, %111 in 1 : vector<16x8xf32>, vector<16x8xf32>, vector<16x8xf32>, vector<16x8xf32> -> vector<16x32xf32>
    %c0_42 = arith.constant 0 : index
    %c0_43 = arith.constant 0 : index
    %c0_44 = arith.constant 0 : index
    %113 = vector.load %arg8[%c0_42, %c0_43, %c0_44] : memref<2x32x32xf32, #tpu.memory_space<vmem>>, vector<1x32x32xf32>
    %114 = vector.shape_cast %113 : vector<1x32x32xf32> to vector<32x32xf32>
    %cst_45 = arith.constant dense<0.000000e+00> : vector<16x32xf32>
    %115 = tpu.matmul %112, %114, %cst_45 {dimension_numbers = #tpu.dot_dimension_numbers<[1], [0], [0], [1], [0, 0, 1, 1], [], []>} : vector<16x32xf32>, vector<32x32xf32>, vector<16x32xf32> -> vector<16x32xf32>
    %116 = arith.addf %1, %115 : vector<16x32xf32>
    %c0_46 = arith.constant 0 : index
    %c0_47 = arith.constant 0 : index
    %c0_48 = arith.constant 0 : index
    %117 = vector.load %arg9[%c0_46, %c0_47, %c0_48] : memref<2x1x32xf32, #tpu.memory_space<vmem>>, vector<1x1x32xf32>
    %118 = vector.shape_cast %117 : vector<1x1x32xf32> to vector<1x32xf32>
    %119 = vector.broadcast %118 : vector<1x32xf32> to vector<16x32xf32>
    %120 = arith.addf %116, %119 : vector<16x32xf32>
    %c0_49 = arith.constant 0 : index
    %c0_50 = arith.constant 0 : index
    %c0_51 = arith.constant 0 : index
    %121 = vector.load %arg10[%c0_49, %c0_50, %c0_51] : memref<2x1x32xf32, #tpu.memory_space<vmem>>, vector<1x1x32xf32>
    %122 = vector.shape_cast %121 : vector<1x1x32xf32> to vector<1x32xf32>
    %c0_52 = arith.constant 0 : index
    %c0_53 = arith.constant 0 : index
    %c0_54 = arith.constant 0 : index
    %123 = vector.load %arg11[%c0_52, %c0_53, %c0_54] : memref<2x1x32xf32, #tpu.memory_space<vmem>>, vector<1x1x32xf32>
    %124 = vector.shape_cast %123 : vector<1x1x32xf32> to vector<1x32xf32>
    %cst_55 = arith.constant dense<0.000000e+00> : vector<16xf32>
    %125 = vector.multi_reduction <add>, %120, %cst_55 [1] : vector<16x32xf32> to vector<16xf32>
    %126 = vector.shape_cast %125 : vector<16xf32> to vector<16x1xf32>
    %cst_56 = arith.constant 3.200000e+01 : f32
    %127 = vector.broadcast %cst_56 : f32 to vector<16x1xf32>
    %128 = arith.divf %126, %127 : vector<16x1xf32>
    %129 = vector.broadcast %128 : vector<16x1xf32> to vector<16x32xf32>
    %130 = arith.subf %120, %129 : vector<16x32xf32>
    %131 = arith.mulf %130, %130 : vector<16x32xf32>
    %cst_57 = arith.constant dense<0.000000e+00> : vector<16xf32>
    %132 = vector.multi_reduction <add>, %131, %cst_57 [1] : vector<16x32xf32> to vector<16xf32>
    %133 = vector.shape_cast %132 : vector<16xf32> to vector<16x1xf32>
    %cst_58 = arith.constant 3.200000e+01 : f32
    %134 = vector.broadcast %cst_58 : f32 to vector<16x1xf32>
    %135 = arith.divf %133, %134 : vector<16x1xf32>
    %136 = vector.broadcast %128 : vector<16x1xf32> to vector<16x32xf32>
    %137 = arith.subf %120, %136 : vector<16x32xf32>
    %cst_59 = arith.constant 9.99999997E-7 : f32
    %138 = vector.broadcast %cst_59 : f32 to vector<16x1xf32>
    %139 = arith.addf %135, %138 : vector<16x1xf32>
    %140 = math.rsqrt %139 : vector<16x1xf32>
    %141 = vector.broadcast %140 : vector<16x1xf32> to vector<16x32xf32>
    %142 = arith.mulf %137, %141 : vector<16x32xf32>
    %143 = vector.broadcast %122 : vector<1x32xf32> to vector<16x32xf32>
    %144 = arith.mulf %142, %143 : vector<16x32xf32>
    %145 = vector.broadcast %124 : vector<1x32xf32> to vector<16x32xf32>
    %146 = arith.addf %144, %145 : vector<16x32xf32>
    %c0_60 = arith.constant 0 : index
    %c0_61 = arith.constant 0 : index
    %c0_62 = arith.constant 0 : index
    %147 = vector.load %arg12[%c0_60, %c0_61, %c0_62] : memref<2x32x64xf32, #tpu.memory_space<vmem>>, vector<1x32x64xf32>
    %148 = vector.shape_cast %147 : vector<1x32x64xf32> to vector<32x64xf32>
    %cst_63 = arith.constant dense<0.000000e+00> : vector<16x64xf32>
    %149 = tpu.matmul %146, %148, %cst_63 {dimension_numbers = #tpu.dot_dimension_numbers<[1], [0], [0], [1], [0, 0, 1, 1], [], []>} : vector<16x32xf32>, vector<32x64xf32>, vector<16x64xf32> -> vector<16x64xf32>
    %c0_64 = arith.constant 0 : index
    %c0_65 = arith.constant 0 : index
    %c0_66 = arith.constant 0 : index
    %150 = vector.load %arg13[%c0_64, %c0_65, %c0_66] : memref<2x1x64xf32, #tpu.memory_space<vmem>>, vector<1x1x64xf32>
    %151 = vector.shape_cast %150 : vector<1x1x64xf32> to vector<1x64xf32>
    %152 = vector.broadcast %151 : vector<1x64xf32> to vector<16x64xf32>
    %153 = arith.addf %149, %152 : vector<16x64xf32>
    %cst_67 = arith.constant 0.000000e+00 : f32
    %154 = vector.broadcast %cst_67 : f32 to vector<16x64xf32>
    %155 = arith.maximumf %153, %154 : vector<16x64xf32>
    %c0_68 = arith.constant 0 : index
    %c0_69 = arith.constant 0 : index
    %c0_70 = arith.constant 0 : index
    %156 = vector.load %arg14[%c0_68, %c0_69, %c0_70] : memref<2x64x32xf32, #tpu.memory_space<vmem>>, vector<1x64x32xf32>
    %157 = vector.shape_cast %156 : vector<1x64x32xf32> to vector<64x32xf32>
    %cst_71 = arith.constant dense<0.000000e+00> : vector<16x32xf32>
    %158 = tpu.matmul %155, %157, %cst_71 {dimension_numbers = #tpu.dot_dimension_numbers<[1], [0], [0], [1], [0, 0, 1, 1], [], []>} : vector<16x64xf32>, vector<64x32xf32>, vector<16x32xf32> -> vector<16x32xf32>
    %159 = arith.addf %120, %158 : vector<16x32xf32>
    %c0_72 = arith.constant 0 : index
    %c0_73 = arith.constant 0 : index
    %c0_74 = arith.constant 0 : index
    %160 = vector.load %arg15[%c0_72, %c0_73, %c0_74] : memref<2x1x32xf32, #tpu.memory_space<vmem>>, vector<1x1x32xf32>
    %161 = vector.shape_cast %160 : vector<1x1x32xf32> to vector<1x32xf32>
    %162 = vector.broadcast %161 : vector<1x32xf32> to vector<16x32xf32>
    %163 = arith.addf %159, %162 : vector<16x32xf32>
    %c1 = arith.constant 1 : index
    %c0_75 = arith.constant 0 : index
    %c0_76 = arith.constant 0 : index
    %164 = vector.load %arg4[%c1, %c0_75, %c0_76] : memref<2x1x32xf32, #tpu.memory_space<vmem>>, vector<1x1x32xf32>
    %165 = vector.shape_cast %164 : vector<1x1x32xf32> to vector<1x32xf32>
    %c1_77 = arith.constant 1 : index
    %c0_78 = arith.constant 0 : index
    %c0_79 = arith.constant 0 : index
    %166 = vector.load %arg5[%c1_77, %c0_78, %c0_79] : memref<2x1x32xf32, #tpu.memory_space<vmem>>, vector<1x1x32xf32>
    %167 = vector.shape_cast %166 : vector<1x1x32xf32> to vector<1x32xf32>
    %cst_80 = arith.constant dense<0.000000e+00> : vector<16xf32>
    %168 = vector.multi_reduction <add>, %163, %cst_80 [1] : vector<16x32xf32> to vector<16xf32>
    %169 = vector.shape_cast %168 : vector<16xf32> to vector<16x1xf32>
    %cst_81 = arith.constant 3.200000e+01 : f32
    %170 = vector.broadcast %cst_81 : f32 to vector<16x1xf32>
    %171 = arith.divf %169, %170 : vector<16x1xf32>
    %172 = vector.broadcast %171 : vector<16x1xf32> to vector<16x32xf32>
    %173 = arith.subf %163, %172 : vector<16x32xf32>
    %174 = arith.mulf %173, %173 : vector<16x32xf32>
    %cst_82 = arith.constant dense<0.000000e+00> : vector<16xf32>
    %175 = vector.multi_reduction <add>, %174, %cst_82 [1] : vector<16x32xf32> to vector<16xf32>
    %176 = vector.shape_cast %175 : vector<16xf32> to vector<16x1xf32>
    %cst_83 = arith.constant 3.200000e+01 : f32
    %177 = vector.broadcast %cst_83 : f32 to vector<16x1xf32>
    %178 = arith.divf %176, %177 : vector<16x1xf32>
    %179 = vector.broadcast %171 : vector<16x1xf32> to vector<16x32xf32>
    %180 = arith.subf %163, %179 : vector<16x32xf32>
    %cst_84 = arith.constant 9.99999997E-7 : f32
    %181 = vector.broadcast %cst_84 : f32 to vector<16x1xf32>
    %182 = arith.addf %178, %181 : vector<16x1xf32>
    %183 = math.rsqrt %182 : vector<16x1xf32>
    %184 = vector.broadcast %183 : vector<16x1xf32> to vector<16x32xf32>
    %185 = arith.mulf %180, %184 : vector<16x32xf32>
    %186 = vector.broadcast %165 : vector<1x32xf32> to vector<16x32xf32>
    %187 = arith.mulf %185, %186 : vector<16x32xf32>
    %188 = vector.broadcast %167 : vector<1x32xf32> to vector<16x32xf32>
    %189 = arith.addf %187, %188 : vector<16x32xf32>
    %c1_85 = arith.constant 1 : index
    %c0_86 = arith.constant 0 : index
    %c0_87 = arith.constant 0 : index
    %190 = vector.load %arg6[%c1_85, %c0_86, %c0_87] : memref<2x32x96xf32, #tpu.memory_space<vmem>>, vector<1x32x96xf32>
    %191 = vector.shape_cast %190 : vector<1x32x96xf32> to vector<32x96xf32>
    %cst_88 = arith.constant dense<0.000000e+00> : vector<16x96xf32>
    %192 = tpu.matmul %189, %191, %cst_88 {dimension_numbers = #tpu.dot_dimension_numbers<[1], [0], [0], [1], [0, 0, 1, 1], [], []>} : vector<16x32xf32>, vector<32x96xf32>, vector<16x96xf32> -> vector<16x96xf32>
    %c1_89 = arith.constant 1 : index
    %c0_90 = arith.constant 0 : index
    %c0_91 = arith.constant 0 : index
    %193 = vector.load %arg7[%c1_89, %c0_90, %c0_91] : memref<2x1x96xf32, #tpu.memory_space<vmem>>, vector<1x1x96xf32>
    %194 = vector.shape_cast %193 : vector<1x1x96xf32> to vector<1x96xf32>
    %195 = vector.broadcast %194 : vector<1x96xf32> to vector<16x96xf32>
    %196 = arith.addf %192, %195 : vector<16x96xf32>
    %197 = vector.extract_strided_slice %196 {offsets = [0, 0], sizes = [16, 32], strides = [1, 1]} : vector<16x96xf32> to vector<16x32xf32>
    %198 = vector.extract_strided_slice %196 {offsets = [0, 32], sizes = [16, 32], strides = [1, 1]} : vector<16x96xf32> to vector<16x32xf32>
    %199 = vector.extract_strided_slice %196 {offsets = [0, 64], sizes = [16, 32], strides = [1, 1]} : vector<16x96xf32> to vector<16x32xf32>
    %200 = vector.extract_strided_slice %197 {offsets = [0, 0], sizes = [16, 8], strides = [1, 1]} : vector<16x32xf32> to vector<16x8xf32>
    %201 = vector.extract_strided_slice %198 {offsets = [0, 0], sizes = [16, 8], strides = [1, 1]} : vector<16x32xf32> to vector<16x8xf32>
    %202 = tpu.transpose %201, [1, 0] : vector<16x8xf32> -> vector<8x16xf32>
    %cst_92 = arith.constant dense<0.000000e+00> : vector<16x16xf32>
    %203 = tpu.matmul %200, %202, %cst_92 {dimension_numbers = #tpu.dot_dimension_numbers<[1], [0], [0], [1], [0, 0, 1, 1], [], []>} : vector<16x8xf32>, vector<8x16xf32>, vector<16x16xf32> -> vector<16x16xf32>
    %cst_93 = arith.constant 0.353553385 : f32
    %204 = vector.broadcast %cst_93 : f32 to vector<16x16xf32>
    %205 = arith.mulf %203, %204 : vector<16x16xf32>
    %206 = arith.addf %205, %3 : vector<16x16xf32>
    %cst_94 = arith.constant dense<0xFF800000> : vector<16xf32>
    %207 = vector.multi_reduction <maximumf>, %206, %cst_94 [1] : vector<16x16xf32> to vector<16xf32>
    %208 = vector.shape_cast %207 : vector<16xf32> to vector<16x1xf32>
    %209 = vector.broadcast %208 : vector<16x1xf32> to vector<16x16xf32>
    %210 = arith.subf %206, %209 : vector<16x16xf32>
    %211 = math.exp %210 : vector<16x16xf32>
    %cst_95 = arith.constant dense<0.000000e+00> : vector<16xf32>
    %212 = vector.multi_reduction <add>, %211, %cst_95 [1] : vector<16x16xf32> to vector<16xf32>
    %213 = vector.shape_cast %212 : vector<16xf32> to vector<16x1xf32>
    %214 = vector.broadcast %213 : vector<16x1xf32> to vector<16x16xf32>
    %215 = arith.divf %211, %214 : vector<16x16xf32>
    %216 = vector.extract_strided_slice %199 {offsets = [0, 0], sizes = [16, 8], strides = [1, 1]} : vector<16x32xf32> to vector<16x8xf32>
    %cst_96 = arith.constant dense<0.000000e+00> : vector<16x8xf32>
    %217 = tpu.matmul %215, %216, %cst_96 {dimension_numbers = #tpu.dot_dimension_numbers<[1], [0], [0], [1], [0, 0, 1, 1], [], []>} : vector<16x16xf32>, vector<16x8xf32>, vector<16x8xf32> -> vector<16x8xf32>
    %218 = vector.extract_strided_slice %197 {offsets = [0, 8], sizes = [16, 8], strides = [1, 1]} : vector<16x32xf32> to vector<16x8xf32>
    %219 = vector.extract_strided_slice %198 {offsets = [0, 8], sizes = [16, 8], strides = [1, 1]} : vector<16x32xf32> to vector<16x8xf32>
    %220 = tpu.transpose %219, [1, 0] : vector<16x8xf32> -> vector<8x16xf32>
    %cst_97 = arith.constant dense<0.000000e+00> : vector<16x16xf32>
    %221 = tpu.matmul %218, %220, %cst_97 {dimension_numbers = #tpu.dot_dimension_numbers<[1], [0], [0], [1], [0, 0, 1, 1], [], []>} : vector<16x8xf32>, vector<8x16xf32>, vector<16x16xf32> -> vector<16x16xf32>
    %cst_98 = arith.constant 0.353553385 : f32
    %222 = vector.broadcast %cst_98 : f32 to vector<16x16xf32>
    %223 = arith.mulf %221, %222 : vector<16x16xf32>
    %224 = arith.addf %223, %3 : vector<16x16xf32>
    %cst_99 = arith.constant dense<0xFF800000> : vector<16xf32>
    %225 = vector.multi_reduction <maximumf>, %224, %cst_99 [1] : vector<16x16xf32> to vector<16xf32>
    %226 = vector.shape_cast %225 : vector<16xf32> to vector<16x1xf32>
    %227 = vector.broadcast %226 : vector<16x1xf32> to vector<16x16xf32>
    %228 = arith.subf %224, %227 : vector<16x16xf32>
    %229 = math.exp %228 : vector<16x16xf32>
    %cst_100 = arith.constant dense<0.000000e+00> : vector<16xf32>
    %230 = vector.multi_reduction <add>, %229, %cst_100 [1] : vector<16x16xf32> to vector<16xf32>
    %231 = vector.shape_cast %230 : vector<16xf32> to vector<16x1xf32>
    %232 = vector.broadcast %231 : vector<16x1xf32> to vector<16x16xf32>
    %233 = arith.divf %229, %232 : vector<16x16xf32>
    %234 = vector.extract_strided_slice %199 {offsets = [0, 8], sizes = [16, 8], strides = [1, 1]} : vector<16x32xf32> to vector<16x8xf32>
    %cst_101 = arith.constant dense<0.000000e+00> : vector<16x8xf32>
    %235 = tpu.matmul %233, %234, %cst_101 {dimension_numbers = #tpu.dot_dimension_numbers<[1], [0], [0], [1], [0, 0, 1, 1], [], []>} : vector<16x16xf32>, vector<16x8xf32>, vector<16x8xf32> -> vector<16x8xf32>
    %236 = vector.extract_strided_slice %197 {offsets = [0, 16], sizes = [16, 8], strides = [1, 1]} : vector<16x32xf32> to vector<16x8xf32>
    %237 = vector.extract_strided_slice %198 {offsets = [0, 16], sizes = [16, 8], strides = [1, 1]} : vector<16x32xf32> to vector<16x8xf32>
    %238 = tpu.transpose %237, [1, 0] : vector<16x8xf32> -> vector<8x16xf32>
    %cst_102 = arith.constant dense<0.000000e+00> : vector<16x16xf32>
    %239 = tpu.matmul %236, %238, %cst_102 {dimension_numbers = #tpu.dot_dimension_numbers<[1], [0], [0], [1], [0, 0, 1, 1], [], []>} : vector<16x8xf32>, vector<8x16xf32>, vector<16x16xf32> -> vector<16x16xf32>
    %cst_103 = arith.constant 0.353553385 : f32
    %240 = vector.broadcast %cst_103 : f32 to vector<16x16xf32>
    %241 = arith.mulf %239, %240 : vector<16x16xf32>
    %242 = arith.addf %241, %3 : vector<16x16xf32>
    %cst_104 = arith.constant dense<0xFF800000> : vector<16xf32>
    %243 = vector.multi_reduction <maximumf>, %242, %cst_104 [1] : vector<16x16xf32> to vector<16xf32>
    %244 = vector.shape_cast %243 : vector<16xf32> to vector<16x1xf32>
    %245 = vector.broadcast %244 : vector<16x1xf32> to vector<16x16xf32>
    %246 = arith.subf %242, %245 : vector<16x16xf32>
    %247 = math.exp %246 : vector<16x16xf32>
    %cst_105 = arith.constant dense<0.000000e+00> : vector<16xf32>
    %248 = vector.multi_reduction <add>, %247, %cst_105 [1] : vector<16x16xf32> to vector<16xf32>
    %249 = vector.shape_cast %248 : vector<16xf32> to vector<16x1xf32>
    %250 = vector.broadcast %249 : vector<16x1xf32> to vector<16x16xf32>
    %251 = arith.divf %247, %250 : vector<16x16xf32>
    %252 = vector.extract_strided_slice %199 {offsets = [0, 16], sizes = [16, 8], strides = [1, 1]} : vector<16x32xf32> to vector<16x8xf32>
    %cst_106 = arith.constant dense<0.000000e+00> : vector<16x8xf32>
    %253 = tpu.matmul %251, %252, %cst_106 {dimension_numbers = #tpu.dot_dimension_numbers<[1], [0], [0], [1], [0, 0, 1, 1], [], []>} : vector<16x16xf32>, vector<16x8xf32>, vector<16x8xf32> -> vector<16x8xf32>
    %254 = vector.extract_strided_slice %197 {offsets = [0, 24], sizes = [16, 8], strides = [1, 1]} : vector<16x32xf32> to vector<16x8xf32>
    %255 = vector.extract_strided_slice %198 {offsets = [0, 24], sizes = [16, 8], strides = [1, 1]} : vector<16x32xf32> to vector<16x8xf32>
    %256 = tpu.transpose %255, [1, 0] : vector<16x8xf32> -> vector<8x16xf32>
    %cst_107 = arith.constant dense<0.000000e+00> : vector<16x16xf32>
    %257 = tpu.matmul %254, %256, %cst_107 {dimension_numbers = #tpu.dot_dimension_numbers<[1], [0], [0], [1], [0, 0, 1, 1], [], []>} : vector<16x8xf32>, vector<8x16xf32>, vector<16x16xf32> -> vector<16x16xf32>
    %cst_108 = arith.constant 0.353553385 : f32
    %258 = vector.broadcast %cst_108 : f32 to vector<16x16xf32>
    %259 = arith.mulf %257, %258 : vector<16x16xf32>
    %260 = arith.addf %259, %3 : vector<16x16xf32>
    %cst_109 = arith.constant dense<0xFF800000> : vector<16xf32>
    %261 = vector.multi_reduction <maximumf>, %260, %cst_109 [1] : vector<16x16xf32> to vector<16xf32>
    %262 = vector.shape_cast %261 : vector<16xf32> to vector<16x1xf32>
    %263 = vector.broadcast %262 : vector<16x1xf32> to vector<16x16xf32>
    %264 = arith.subf %260, %263 : vector<16x16xf32>
    %265 = math.exp %264 : vector<16x16xf32>
    %cst_110 = arith.constant dense<0.000000e+00> : vector<16xf32>
    %266 = vector.multi_reduction <add>, %265, %cst_110 [1] : vector<16x16xf32> to vector<16xf32>
    %267 = vector.shape_cast %266 : vector<16xf32> to vector<16x1xf32>
    %268 = vector.broadcast %267 : vector<16x1xf32> to vector<16x16xf32>
    %269 = arith.divf %265, %268 : vector<16x16xf32>
    %270 = vector.extract_strided_slice %199 {offsets = [0, 24], sizes = [16, 8], strides = [1, 1]} : vector<16x32xf32> to vector<16x8xf32>
    %cst_111 = arith.constant dense<0.000000e+00> : vector<16x8xf32>
    %271 = tpu.matmul %269, %270, %cst_111 {dimension_numbers = #tpu.dot_dimension_numbers<[1], [0], [0], [1], [0, 0, 1, 1], [], []>} : vector<16x16xf32>, vector<16x8xf32>, vector<16x8xf32> -> vector<16x8xf32>
    %272 = tpu.concatenate %217, %235, %253, %271 in 1 : vector<16x8xf32>, vector<16x8xf32>, vector<16x8xf32>, vector<16x8xf32> -> vector<16x32xf32>
    %c1_112 = arith.constant 1 : index
    %c0_113 = arith.constant 0 : index
    %c0_114 = arith.constant 0 : index
    %273 = vector.load %arg8[%c1_112, %c0_113, %c0_114] : memref<2x32x32xf32, #tpu.memory_space<vmem>>, vector<1x32x32xf32>
    %274 = vector.shape_cast %273 : vector<1x32x32xf32> to vector<32x32xf32>
    %cst_115 = arith.constant dense<0.000000e+00> : vector<16x32xf32>
    %275 = tpu.matmul %272, %274, %cst_115 {dimension_numbers = #tpu.dot_dimension_numbers<[1], [0], [0], [1], [0, 0, 1, 1], [], []>} : vector<16x32xf32>, vector<32x32xf32>, vector<16x32xf32> -> vector<16x32xf32>
    %276 = arith.addf %163, %275 : vector<16x32xf32>
    %c1_116 = arith.constant 1 : index
    %c0_117 = arith.constant 0 : index
    %c0_118 = arith.constant 0 : index
    %277 = vector.load %arg9[%c1_116, %c0_117, %c0_118] : memref<2x1x32xf32, #tpu.memory_space<vmem>>, vector<1x1x32xf32>
    %278 = vector.shape_cast %277 : vector<1x1x32xf32> to vector<1x32xf32>
    %279 = vector.broadcast %278 : vector<1x32xf32> to vector<16x32xf32>
    %280 = arith.addf %276, %279 : vector<16x32xf32>
    %c1_119 = arith.constant 1 : index
    %c0_120 = arith.constant 0 : index
    %c0_121 = arith.constant 0 : index
    %281 = vector.load %arg10[%c1_119, %c0_120, %c0_121] : memref<2x1x32xf32, #tpu.memory_space<vmem>>, vector<1x1x32xf32>
    %282 = vector.shape_cast %281 : vector<1x1x32xf32> to vector<1x32xf32>
    %c1_122 = arith.constant 1 : index
    %c0_123 = arith.constant 0 : index
    %c0_124 = arith.constant 0 : index
    %283 = vector.load %arg11[%c1_122, %c0_123, %c0_124] : memref<2x1x32xf32, #tpu.memory_space<vmem>>, vector<1x1x32xf32>
    %284 = vector.shape_cast %283 : vector<1x1x32xf32> to vector<1x32xf32>
    %cst_125 = arith.constant dense<0.000000e+00> : vector<16xf32>
    %285 = vector.multi_reduction <add>, %280, %cst_125 [1] : vector<16x32xf32> to vector<16xf32>
    %286 = vector.shape_cast %285 : vector<16xf32> to vector<16x1xf32>
    %cst_126 = arith.constant 3.200000e+01 : f32
    %287 = vector.broadcast %cst_126 : f32 to vector<16x1xf32>
    %288 = arith.divf %286, %287 : vector<16x1xf32>
    %289 = vector.broadcast %288 : vector<16x1xf32> to vector<16x32xf32>
    %290 = arith.subf %280, %289 : vector<16x32xf32>
    %291 = arith.mulf %290, %290 : vector<16x32xf32>
    %cst_127 = arith.constant dense<0.000000e+00> : vector<16xf32>
    %292 = vector.multi_reduction <add>, %291, %cst_127 [1] : vector<16x32xf32> to vector<16xf32>
    %293 = vector.shape_cast %292 : vector<16xf32> to vector<16x1xf32>
    %cst_128 = arith.constant 3.200000e+01 : f32
    %294 = vector.broadcast %cst_128 : f32 to vector<16x1xf32>
    %295 = arith.divf %293, %294 : vector<16x1xf32>
    %296 = vector.broadcast %288 : vector<16x1xf32> to vector<16x32xf32>
    %297 = arith.subf %280, %296 : vector<16x32xf32>
    %cst_129 = arith.constant 9.99999997E-7 : f32
    %298 = vector.broadcast %cst_129 : f32 to vector<16x1xf32>
    %299 = arith.addf %295, %298 : vector<16x1xf32>
    %300 = math.rsqrt %299 : vector<16x1xf32>
    %301 = vector.broadcast %300 : vector<16x1xf32> to vector<16x32xf32>
    %302 = arith.mulf %297, %301 : vector<16x32xf32>
    %303 = vector.broadcast %282 : vector<1x32xf32> to vector<16x32xf32>
    %304 = arith.mulf %302, %303 : vector<16x32xf32>
    %305 = vector.broadcast %284 : vector<1x32xf32> to vector<16x32xf32>
    %306 = arith.addf %304, %305 : vector<16x32xf32>
    %c1_130 = arith.constant 1 : index
    %c0_131 = arith.constant 0 : index
    %c0_132 = arith.constant 0 : index
    %307 = vector.load %arg12[%c1_130, %c0_131, %c0_132] : memref<2x32x64xf32, #tpu.memory_space<vmem>>, vector<1x32x64xf32>
    %308 = vector.shape_cast %307 : vector<1x32x64xf32> to vector<32x64xf32>
    %cst_133 = arith.constant dense<0.000000e+00> : vector<16x64xf32>
    %309 = tpu.matmul %306, %308, %cst_133 {dimension_numbers = #tpu.dot_dimension_numbers<[1], [0], [0], [1], [0, 0, 1, 1], [], []>} : vector<16x32xf32>, vector<32x64xf32>, vector<16x64xf32> -> vector<16x64xf32>
    %c1_134 = arith.constant 1 : index
    %c0_135 = arith.constant 0 : index
    %c0_136 = arith.constant 0 : index
    %310 = vector.load %arg13[%c1_134, %c0_135, %c0_136] : memref<2x1x64xf32, #tpu.memory_space<vmem>>, vector<1x1x64xf32>
    %311 = vector.shape_cast %310 : vector<1x1x64xf32> to vector<1x64xf32>
    %312 = vector.broadcast %311 : vector<1x64xf32> to vector<16x64xf32>
    %313 = arith.addf %309, %312 : vector<16x64xf32>
    %cst_137 = arith.constant 0.000000e+00 : f32
    %314 = vector.broadcast %cst_137 : f32 to vector<16x64xf32>
    %315 = arith.maximumf %313, %314 : vector<16x64xf32>
    %c1_138 = arith.constant 1 : index
    %c0_139 = arith.constant 0 : index
    %c0_140 = arith.constant 0 : index
    %316 = vector.load %arg14[%c1_138, %c0_139, %c0_140] : memref<2x64x32xf32, #tpu.memory_space<vmem>>, vector<1x64x32xf32>
    %317 = vector.shape_cast %316 : vector<1x64x32xf32> to vector<64x32xf32>
    %cst_141 = arith.constant dense<0.000000e+00> : vector<16x32xf32>
    %318 = tpu.matmul %315, %317, %cst_141 {dimension_numbers = #tpu.dot_dimension_numbers<[1], [0], [0], [1], [0, 0, 1, 1], [], []>} : vector<16x64xf32>, vector<64x32xf32>, vector<16x32xf32> -> vector<16x32xf32>
    %319 = arith.addf %280, %318 : vector<16x32xf32>
    %c1_142 = arith.constant 1 : index
    %c0_143 = arith.constant 0 : index
    %c0_144 = arith.constant 0 : index
    %320 = vector.load %arg15[%c1_142, %c0_143, %c0_144] : memref<2x1x32xf32, #tpu.memory_space<vmem>>, vector<1x1x32xf32>
    %321 = vector.shape_cast %320 : vector<1x1x32xf32> to vector<1x32xf32>
    %322 = vector.broadcast %321 : vector<1x32xf32> to vector<16x32xf32>
    %323 = arith.addf %319, %322 : vector<16x32xf32>
    %c0_145 = arith.constant 0 : index
    %c0_146 = arith.constant 0 : index
    %324 = vector.load %arg16[%c0_145, %c0_146] : memref<1x32xf32, #tpu.memory_space<vmem>>, vector<1x32xf32>
    %c0_147 = arith.constant 0 : index
    %c0_148 = arith.constant 0 : index
    %325 = vector.load %arg17[%c0_147, %c0_148] : memref<1x32xf32, #tpu.memory_space<vmem>>, vector<1x32xf32>
    %cst_149 = arith.constant dense<0.000000e+00> : vector<16xf32>
    %326 = vector.multi_reduction <add>, %323, %cst_149 [1] : vector<16x32xf32> to vector<16xf32>
    %327 = vector.shape_cast %326 : vector<16xf32> to vector<16x1xf32>
    %cst_150 = arith.constant 3.200000e+01 : f32
    %328 = vector.broadcast %cst_150 : f32 to vector<16x1xf32>
    %329 = arith.divf %327, %328 : vector<16x1xf32>
    %330 = vector.broadcast %329 : vector<16x1xf32> to vector<16x32xf32>
    %331 = arith.subf %323, %330 : vector<16x32xf32>
    %332 = arith.mulf %331, %331 : vector<16x32xf32>
    %cst_151 = arith.constant dense<0.000000e+00> : vector<16xf32>
    %333 = vector.multi_reduction <add>, %332, %cst_151 [1] : vector<16x32xf32> to vector<16xf32>
    %334 = vector.shape_cast %333 : vector<16xf32> to vector<16x1xf32>
    %cst_152 = arith.constant 3.200000e+01 : f32
    %335 = vector.broadcast %cst_152 : f32 to vector<16x1xf32>
    %336 = arith.divf %334, %335 : vector<16x1xf32>
    %337 = vector.broadcast %329 : vector<16x1xf32> to vector<16x32xf32>
    %338 = arith.subf %323, %337 : vector<16x32xf32>
    %cst_153 = arith.constant 9.99999997E-7 : f32
    %339 = vector.broadcast %cst_153 : f32 to vector<16x1xf32>
    %340 = arith.addf %336, %339 : vector<16x1xf32>
    %341 = math.rsqrt %340 : vector<16x1xf32>
    %342 = vector.broadcast %341 : vector<16x1xf32> to vector<16x32xf32>
    %343 = arith.mulf %338, %342 : vector<16x32xf32>
    %344 = vector.broadcast %324 : vector<1x32xf32> to vector<16x32xf32>
    %345 = arith.mulf %343, %344 : vector<16x32xf32>
    %346 = vector.broadcast %325 : vector<1x32xf32> to vector<16x32xf32>
    %347 = arith.addf %345, %346 : vector<16x32xf32>
    %c0_154 = arith.constant 0 : index
    %c0_155 = arith.constant 0 : index
    %c0_156 = arith.constant 0 : index
    %348 = vector.load %arg3[%c0_154, %c0_155, %c0_156] : memref<1x2x16xf32, #tpu.memory_space<vmem>>, vector<1x2x16xf32>
    %349 = vector.shape_cast %348 : vector<1x2x16xf32> to vector<2x16xf32>
    %cst_157 = arith.constant dense<0.000000e+00> : vector<2x32xf32>
    %350 = tpu.matmul %349, %347, %cst_157 {dimension_numbers = #tpu.dot_dimension_numbers<[1], [0], [0], [1], [0, 0, 1, 1], [], []>} : vector<2x16xf32>, vector<16x32xf32>, vector<2x32xf32> -> vector<2x32xf32>
    %c0_158 = arith.constant 0 : index
    %c0_159 = arith.constant 0 : index
    %c0_160 = arith.constant 0 : index
    %351 = vector.load %arg20[%c0_158, %c0_159, %c0_160] : memref<1x2x32xf32, #tpu.memory_space<vmem>>, vector<1x2x32xf32>
    %352 = vector.shape_cast %351 : vector<1x2x32xf32> to vector<2x32xf32>
    %353 = vector.shape_cast %350 : vector<2x32xf32> to vector<1x2x32xf32>
    tpu.vector_store %arg20[%c0_158, %c0_159, %c0_160], %353 {strides = array<i32>} : memref<1x2x32xf32, #tpu.memory_space<vmem>>, vector<1x2x32xf32>,
    %c0_161 = arith.constant 0 : index
    %c0_162 = arith.constant 0 : index
    %354 = vector.load %arg18[%c0_161, %c0_162] : memref<32x128xf32, #tpu.memory_space<vmem>>, vector<32x128xf32>
    %cst_163 = arith.constant dense<0.000000e+00> : vector<16x128xf32>
    %355 = tpu.matmul %347, %354, %cst_163 {dimension_numbers = #tpu.dot_dimension_numbers<[1], [0], [0], [1], [0, 0, 1, 1], [], []>} : vector<16x32xf32>, vector<32x128xf32>, vector<16x128xf32> -> vector<16x128xf32>
    %c0_164 = arith.constant 0 : index
    %c0_165 = arith.constant 0 : index
    %356 = vector.load %arg19[%c0_164, %c0_165] : memref<1x128xf32, #tpu.memory_space<vmem>>, vector<1x128xf32>
    %357 = vector.broadcast %356 : vector<1x128xf32> to vector<16x128xf32>
    %358 = arith.addf %355, %357 : vector<16x128xf32>
    %cst_166 = arith.constant dense<0xFF800000> : vector<16xf32>
    %359 = vector.multi_reduction <maximumf>, %358, %cst_166 [1] : vector<16x128xf32> to vector<16xf32>
    %360 = vector.shape_cast %359 : vector<16xf32> to vector<16x1xf32>
    %361 = vector.broadcast %360 : vector<16x1xf32> to vector<16x128xf32>
    %362 = arith.subf %358, %361 : vector<16x128xf32>
    %363 = math.exp %362 : vector<16x128xf32>
    %cst_167 = arith.constant dense<0.000000e+00> : vector<16xf32>
    %364 = vector.multi_reduction <add>, %363, %cst_167 [1] : vector<16x128xf32> to vector<16xf32>
    %365 = vector.shape_cast %364 : vector<16xf32> to vector<16x1xf32>
    %366 = math.log %365 : vector<16x1xf32>
    %367 = arith.addf %366, %360 : vector<16x1xf32>
    %368 = vector.broadcast %367 : vector<16x1xf32> to vector<16x128xf32>
    %369 = arith.subf %358, %368 : vector<16x128xf32>
    %c0_168 = arith.constant 0 : index
    %c0_169 = arith.constant 0 : index
    %c0_170 = arith.constant 0 : index
    %370 = vector.load %arg21[%c0_168, %c0_169, %c0_170] : memref<1x16x128xf32, #tpu.memory_space<vmem>>, vector<1x16x128xf32>
    %371 = vector.shape_cast %370 : vector<1x16x128xf32> to vector<16x128xf32>
    %372 = vector.shape_cast %369 : vector<16x128xf32> to vector<1x16x128xf32>
    tpu.vector_store %arg21[%c0_168, %c0_169, %c0_170], %372 {strides = array<i32>} : memref<1x16x128xf32, #tpu.memory_space<vmem>>, vector<1x16x128xf32>,
    return
  }
  func.func @transform_0(%arg0: i32) -> (i32, i32, i32) {
    %c0_i32 = arith.constant 0 : i32
    %c0_i32_0 = arith.constant 0 : i32
    %c0_i32_1 = arith.constant 0 : i32
    return %arg0, %c0_i32, %c0_i32_0 : i32, i32, i32
  }
  func.func @transform_1(%arg0: i32) -> (i32, i32, i32) {
    %c0_i32 = arith.constant 0 : i32
    %c0_i32_0 = arith.constant 0 : i32
    %c0_i32_1 = arith.constant 0 : i32
    return %arg0, %c0_i32, %c0_i32_0 : i32, i32, i32
  }
  func.func @transform_2(%arg0: i32) -> (i32, i32, i32) {
    %c0_i32 = arith.constant 0 : i32
    %c0_i32_0 = arith.constant 0 : i32
    %c0_i32_1 = arith.constant 0 : i32
    return %arg0, %c0_i32, %c0_i32_0 : i32, i32, i32
  }
  func.func @transform_3(%arg0: i32) -> (i32, i32, i32) {
    %c0_i32 = arith.constant 0 : i32
    %c0_i32_0 = arith.constant 0 : i32
    %c0_i32_1 = arith.constant 0 : i32
    %c0_i32_2 = arith.constant 0 : i32
    return %c0_i32, %c0_i32_0, %c0_i32_1 : i32, i32, i32
  }
  func.func @transform_4(%arg0: i32) -> (i32, i32, i32) {
    %c0_i32 = arith.constant 0 : i32
    %c0_i32_0 = arith.constant 0 : i32
    %c0_i32_1 = arith.constant 0 : i32
    %c0_i32_2 = arith.constant 0 : i32
    return %c0_i32, %c0_i32_0, %c0_i32_1 : i32, i32, i32
  }
  func.func @transform_5(%arg0: i32) -> (i32, i32, i32) {
    %c0_i32 = arith.constant 0 : i32
    %c0_i32_0 = arith.constant 0 : i32
    %c0_i32_1 = arith.constant 0 : i32
    %c0_i32_2 = arith.constant 0 : i32
    return %c0_i32, %c0_i32_0, %c0_i32_1 : i32, i32, i32
  }
  func.func @transform_6(%arg0: i32) -> (i32, i32, i32) {
    %c0_i32 = arith.constant 0 : i32
    %c0_i32_0 = arith.constant 0 : i32
    %c0_i32_1 = arith.constant 0 : i32
    %c0_i32_2 = arith.constant 0 : i32
    return %c0_i32, %c0_i32_0, %c0_i32_1 : i32, i32, i32
  }
  func.func @transform_7(%arg0: i32) -> (i32, i32, i32) {
    %c0_i32 = arith.constant 0 : i32
    %c0_i32_0 = arith.constant 0 : i32
    %c0_i32_1 = arith.constant 0 : i32
    %c0_i32_2 = arith.constant 0 : i32
    return %c0_i32, %c0_i32_0, %c0_i32_1 : i32, i32, i32
  }
  func.func @transform_8(%arg0: i32) -> (i32, i32, i32) {
    %c0_i32 = arith.constant 0 : i32
    %c0_i32_0 = arith.constant 0 : i32
    %c0_i32_1 = arith.constant 0 : i32
    %c0_i32_2 = arith.constant 0 : i32
    return %c0_i32, %c0_i32_0, %c0_i32_1 : i32, i32, i32
  }
  func.func @transform_9(%arg0: i32) -> (i32, i32, i32) {
    %c0_i32 = arith.constant 0 : i32
    %c0_i32_0 = arith.constant 0 : i32
    %c0_i32_1 = arith.constant 0 : i32
    %c0_i32_2 = arith.constant 0 : i32
    return %c0_i32, %c0_i32_0, %c0_i32_1 : i32, i32, i32
  }
  func.func @transform_10(%arg0: i32) -> (i32, i32, i32) {
    %c0_i32 = arith.constant 0 : i32
    %c0_i32_0 = arith.constant 0 : i32
    %c0_i32_1 = arith.constant 0 : i32
    %c0_i32_2 = arith.constant 0 : i32
    return %c0_i32, %c0_i32_0, %c0_i32_1 : i32, i32, i32
  }
  func.func @transform_11(%arg0: i32) -> (i32, i32, i32) {
    %c0_i32 = arith.constant 0 : i32
    %c0_i32_0 = arith.constant 0 : i32
    %c0_i32_1 = arith.constant 0 : i32
    %c0_i32_2 = arith.constant 0 : i32
    return %c0_i32, %c0_i32_0, %c0_i32_1 : i32, i32, i32
  }
  func.func @transform_12(%arg0: i32) -> (i32, i32, i32) {
    %c0_i32 = arith.constant 0 : i32
    %c0_i32_0 = arith.constant 0 : i32
    %c0_i32_1 = arith.constant 0 : i32
    %c0_i32_2 = arith.constant 0 : i32
    return %c0_i32, %c0_i32_0, %c0_i32_1 : i32, i32, i32
  }
  func.func @transform_13(%arg0: i32) -> (i32, i32, i32) {
    %c0_i32 = arith.constant 0 : i32
    %c0_i32_0 = arith.constant 0 : i32
    %c0_i32_1 = arith.constant 0 : i32
    %c0_i32_2 = arith.constant 0 : i32
    return %c0_i32, %c0_i32_0, %c0_i32_1 : i32, i32, i32
  }
  func.func @transform_14(%arg0: i32) -> (i32, i32, i32) {
    %c0_i32 = arith.constant 0 : i32
    %c0_i32_0 = arith.constant 0 : i32
    %c0_i32_1 = arith.constant 0 : i32
    %c0_i32_2 = arith.constant 0 : i32
    return %c0_i32, %c0_i32_0, %c0_i32_1 : i32, i32, i32
  }
  func.func @transform_15(%arg0: i32) -> (i32, i32) {
    %c0_i32 = arith.constant 0 : i32
    %c0_i32_0 = arith.constant 0 : i32
    %c0_i32_1 = arith.constant 0 : i32
    return %c0_i32, %c0_i32_0 : i32, i32
  }
  func.func @transform_16(%arg0: i32) -> (i32, i32) {
    %c0_i32 = arith.constant 0 : i32
    %c0_i32_0 = arith.constant 0 : i32
    %c0_i32_1 = arith.constant 0 : i32
    return %c0_i32, %c0_i32_0 : i32, i32
  }
  func.func @transform_17(%arg0: i32) -> (i32, i32) {
    %c0_i32 = arith.constant 0 : i32
    %c0_i32_0 = arith.constant 0 : i32
    %c0_i32_1 = arith.constant 0 : i32
    return %c0_i32, %c0_i32_0 : i32, i32
  }
  func.func @transform_18(%arg0: i32) -> (i32, i32) {
    %c0_i32 = arith.constant 0 : i32
    %c0_i32_0 = arith.constant 0 : i32
    %c0_i32_1 = arith.constant 0 : i32
    return %c0_i32, %c0_i32_0 : i32, i32
  }
  func.func @transform_19(%arg0: i32) -> (i32, i32, i32) {
    %c0_i32 = arith.constant 0 : i32
    %c0_i32_0 = arith.constant 0 : i32
    %c0_i32_1 = arith.constant 0 : i32
    return %arg0, %c0_i32, %c0_i32_0 : i32, i32, i32
  }
  func.func @transform_20(%arg0: i32) -> (i32, i32, i32) {
    %c0_i32 = arith.constant 0 : i32
    %c0_i32_0 = arith.constant 0 : i32
    %c0_i32_1 = arith.constant 0 : i32
    return %arg0, %c0_i32, %c0_i32_0 : i32, i32, i32
  }
}

</mosaic_0001>

<bundles_post_ra>
// kernel: dissent_forward.3
= control target key start
LH: loop header
LB: loop body
LE: loop exit
PB: predicated region body
PF: predicated region fallthrough
CT: control target
= control target key end

     0   :  { %s477_s9 = smov 32   ;;  %v478_v5 = vmov 0.0   ;;  %vm480_vm0 = vmmov 0   ;;  %s481_s15 = smov 64   ;;  %s688_s0 = inlined_call_operand.vmem [shape: f32[2,32], index: 0, kind: input, shape index: {}]   ;;  %s689_s1 = inlined_call_operand.vmem [shape: f32[2,32], index: 1, kind: input, shape index: {}]   ;;  %s690_s2 = inlined_call_operand.vmem [shape: f32[128,64], index: 2, kind: input, shape index: {}]   ;;  %s691_s3 = inlined_call_operand.vmem [shape: f32[1,64], index: 3, kind: input, shape index: {}]   ;;  %s692_s4 = inlined_call_operand.vmem [shape: f32[64,64], index: 4, kind: input, shape index: {}]   ;;  %s693_s5 = inlined_call_operand.vmem [shape: f32[1,64], index: 5, kind: input, shape index: {}]   ;;  %s694_s6 = inlined_call_operand.vmem [shape: f32[64,128], index: 6, kind: input, shape index: {}]   ;;  %s695_s7 = inlined_call_operand.vmem [shape: f32[1,128], index: 7, kind: input, shape index: {}]   ;;  %s696_s8 = inlined_call_operand.hbm [shape: f32[2,128], index: 8, kind: output, shape index: {}]  }
   0x1   :  { %v31_v0 = vld [vmem:[%s689_s1] sm:$0x3]  ;;  %v67_v4 = vld [vmem:[%s690_s2 + $0x78] sm:$0xff]  ;;  %376 = vmatprep.subr.mxu0 %v478_v5  ;;  %v66_v6 = vld [vmem:[%s690_s2 + $0x70] sm:$0xff]  ;;  %411 = vmatprep.subr.mxu1 %v478_v5 }
   0x2   :  { %v534_v1 = vld [vmem:[%s688_s0] sm:$0x3]  ;;  %35 = vrot.lane.b32.xlu0 %v31_v0, %s477_s9  ;;  %s479_s0 = smov 96   ;;  %377 = vmatpush3.msra.mxu0 %v67_v4  ;;  %v65_v7 = vld [vmem:[%s690_s2 + $0x68] sm:$0xff]  ;;  %v152_v9 = vld [vmem:[%s692_s4 + $0x38] sm:$0xff] }
   0x3   :  { %v32_v2 = vsub.f32 %v534_v1, %v31_v0  ;;  %v33_v3 = vmul.f32 %v31_v0, %v534_v1  ;;  %378 = vmatprep.subr.mxu0 %v478_v5  ;;  %408 = vmatprep.mubr.msk.f32.mxu0 %vm480_vm0, %v478_v5  ;;  %v64_v8 = vld [vmem:[%s690_s2 + $0x60] sm:$0xff]  ;;  %v151_v10 = vld [vmem:[%s692_s4 + $0x30] sm:$0xff]  ;;  %v63_v11 = vld [vmem:[%s690_s2 + $0x58] sm:$0xff] }
   0x4   :  { %379 = vmatpush3.msra.mxu0 %v66_v6  ;;  %427 = vmatprep.mubr.msk.f32.mxu1 %vm480_vm0, %v478_v5  ;;  %v150_v12 = vld [vmem:[%s692_s4 + $0x28] sm:$0xff] }
   0x5   :  { %43 = vrot.lane.b32.xlu1 %v33_v3, %s479_s0  ;;  %380 = vmatprep.subr.mxu0 %v478_v5 }
   0x6   :  { %39 = vrot.lane.b32.xlu0 %v32_v2, %s481_s15  ;;  %381 = vmatpush3.msra.mxu0 %v65_v7 }
   0x7   :  { %412 = vmatpush3.msra.mxu1 %v152_v9  ;;  %382 = vmatprep.subr.mxu0 %v478_v5 }
   0x8   :  { %413 = vmatprep.subr.mxu1 %v478_v5 }
   0x9   :  { %13 = vsyncpa [#allocation3], 0  ;;  %383 = vmatpush3.msra.mxu0 %v64_v8  ;;  %414 = vmatpush3.msra.mxu1 %v151_v10  ;;  %v62_v13 = vld [vmem:[%s690_s2 + $0x50] sm:$0xff]  ;;  %v149_v14 = vld [vmem:[%s692_s4 + $0x20] sm:$0xff]  ;;  %vm46_vm1 = vcmask 261120   ;;  %vm48_vm2 = vcmask 523264  }
   0xa   :  { %384 = vmatprep.subr.mxu0 %v478_v5  ;;  %415 = vmatprep.subr.mxu1 %v478_v5  ;;  %v61_v15 = vld [vmem:[%s690_s2 + $0x48] sm:$0xff]  ;;  %v148_v16 = vld [vmem:[%s692_s4 + $0x18] sm:$0xff]  ;;  %v60_v17 = vld [vmem:[%s690_s2 + $0x40] sm:$0xff]  ;;  %vm50_vm3 = vcmask 785408   ;;  %s482_s29 = smov [#allocation2]  }
   0xb   :  { %385 = vmatpush3.msra.mxu0 %v63_v11  ;;  %416 = vmatpush3.msra.mxu1 %v150_v12  ;;  %v147_v18 = vld [vmem:[%s692_s4 + $0x10] sm:$0xff]  ;;  %v59_v19 = vld [vmem:[%s690_s2 + $0x38] sm:$0xff]  ;;  %v57_v21 = vld [vmem:[%s690_s2 + $0x28] sm:$0xff]  ;;  %s328_s30 = sshll.u32 %s482_s29, 4  ;;  %s329_s30 = int_to_ptr.vmem [resolvable:$true] %s328_s30 }
   0xc   :  { %386 = vmatprep.subr.mxu0 %v478_v5  ;;  %417 = vmatprep.subr.mxu1 %v478_v5  ;;  %v58_v20 = vld [vmem:[%s690_s2 + $0x30] sm:$0xff]  ;;  %v56_v22 = vld [vmem:[%s690_s2 + $0x20] sm:$0xff]  ;;  %v55_v23 = vld [vmem:[%s690_s2 + $0x18] sm:$0xff]  ;;  %p460_p1 = scmp.lt.s32.totalorder %s329_s30, %s329_s30 }
   0xd   :  { %387 = vmatpush3.msra.mxu0 %v62_v13  ;;  %418 = vmatpush3.msra.mxu1 %v149_v14  ;;  %v54_v24 = vld [vmem:[%s690_s2 + $0x10] sm:$0xff]  ;;  %v53_v25 = vld [vmem:[%s690_s2 + $0x8] sm:$0xff]  ;;  %v52_v26 = vld [vmem:[%s690_s2] sm:$0xff] }
   0xe   :  { %388 = vmatprep.subr.mxu0 %v478_v5  ;;  %419 = vmatprep.subr.mxu1 %v478_v5  ;;  %v146_v33 = vld [vmem:[%s692_s4 + $0x8] sm:$0xff]  ;;  %v145_v34 = vld [vmem:[%s692_s4] sm:$0xff]  ;;  %v240_v38 = vld [vmem:[%s694_s6 + $0x38] sm:$0xff] }
   0xf   :  { %389 = vmatpush3.msra.mxu0 %v61_v15  ;;  %420 = vmatpush3.msra.mxu1 %v148_v16  ;;  %v336_v35 = vld [vmem:[%s691_s3] ss:$0 sm:$0xff]  ;;  %v239_v40 = vld [vmem:[%s694_s6 + $0x30] sm:$0xff]  ;;  %v238_v41 = vld [vmem:[%s694_s6 + $0x28] sm:$0xff] }
  0x10   :  { %390 = vmatprep.subr.mxu0 %v478_v5  ;;  %421 = vmatprep.subr.mxu1 %v478_v5  ;;  %v237_v42 = vld [vmem:[%s694_s6 + $0x20] sm:$0xff]  ;;  %v236_v43 = vld [vmem:[%s694_s6 + $0x18] sm:$0xff]  ;;  %v235_v44 = vld [vmem:[%s694_s6 + $0x10] sm:$0xff] }
  0x11   :  { %391 = vmatpush3.msra.mxu0 %v60_v17  ;;  %422 = vmatpush3.msra.mxu1 %v147_v18  ;;  %v234_v45 = vld [vmem:[%s694_s6 + $0x8] sm:$0xff]  ;;  %v233_v46 = vld [vmem:[%s694_s6] sm:$0xff]  ;;  %s455_s6 = scalar_lea.vmem %s329_s30, 32 }
  0x12   :  { %392 = vmatprep.subr.mxu0 %v478_v5  ;;  %423 = vmatprep.subr.mxu1 %v478_v5  ;;  %v337_v47 = vld [vmem:[%s693_s5] ss:$0 sm:$0xff]  ;;  %p456_p0 = scmp.ne.s32.totalorder %s329_s30, %s455_s6  ;;  %p461_p2 = scmp.lt.s32.totalorder %s455_s6, %s455_s6 }
  0x13   :  { %393 = vmatpush3.msra.mxu0 %v59_v19  ;;  %424 = vmatpush3.msra.mxu1 %v146_v33  ;;  %v339_v51 = vld [vmem:[%s695_s7] ss:$0 sm:$0xff] }
  0x14   :  { %394 = vmatprep.subr.mxu0 %v478_v5  ;;  %425 = vmatprep.subr.mxu1 %v478_v5  ;;  %p462_p3 = por %p461_p2, %p460_p1 }
  0x15   :  { %395 = vmatpush3.msra.mxu0 %v58_v20  ;;  %426 = vmatpush3.msra.mxu1 %v145_v34 }
  0x16   :  { %396 = vmatprep.subr.mxu0 %v478_v5  ;;  %430 = vmatprep.subr.mxu1 %v478_v5  ;;  %p463_p4 = pnand %p462_p3, %p456_p0 }
  0x17   :  { %397 = vmatpush3.msra.mxu0 %v57_v21 }
  0x18   :  { %398 = vmatprep.subr.mxu0 %v478_v5 }
  0x19   :  { %399 = vmatpush3.msra.mxu0 %v56_v22 }
  0x1a   :  { %400 = vmatprep.subr.mxu0 %v478_v5 }
  0x1b   :  { %401 = vmatpush3.msra.mxu0 %v55_v23 }
  0x1c   :  { %402 = vmatprep.subr.mxu0 %v478_v5 }
  0x1d   :  { %403 = vmatpush3.msra.mxu0 %v54_v24 }
  0x1e   :  { %404 = vmatprep.subr.mxu0 %v478_v5 }
  0x1f   :  { %405 = vmatpush3.msra.mxu0 %v53_v25 }
  0x20   :  { %406 = vmatprep.subr.mxu0 %v478_v5 }
  0x21   :  { %407 = vmatpush3.msra.mxu0 %v52_v26 }
  0x74   :  { %v36_v27 = vpop.permute.xlu0 %35 }
  0x75   :  { %v47_v29 = vsel %vm46_vm1, %v534_v1, %v36_v27 }
  0x77   :  { %v44_v28 = vpop.permute.xlu1 %43 }
  0x78   :  { %v40_v30 = vpop.permute.xlu0 %39 }
  0x79   :  { %v49_v31 = vsel %vm48_vm2, %v47_v29, %v40_v30 }
  0x7a   :  { %v51_v32 = vsel %vm50_vm3, %v49_v31, %v44_v28 }
  0x7b   :  { %409 = vmatmul.mubr.f32.vlgmr.msra.gmra.mxu0 %v51_v32 }
 0x13b   :  { %v141_v36 = vpop.f32.mrf.mxu0 }
 0x13c   :  { %v142_v37 = vadd.f32 %v336_v35, %v141_v36 }
 0x13d   :  { %v410_v39 = vpop.f32.mrf.mxu0 }
 0x13e   :  { %428 = vmatmul.mubr.msk.f32.vlgmr.msra.gmra.mxu1 %vm48_vm2, %v142_v37 }
 0x13f   :  { %431 = vmatpush3.msra.mxu1 %v240_v38  ;;  %446 = vmatprep.mubr.msk.f32.mxu1 %vm480_vm0, %v478_v5 }
 0x140   :  { %432 = vmatprep.subr.mxu1 %v478_v5 }
 0x141   :  { %433 = vmatpush3.msra.mxu1 %v239_v40 }
 0x142   :  { %434 = vmatprep.subr.mxu1 %v478_v5 }
 0x143   :  { %435 = vmatpush3.msra.mxu1 %v238_v41 }
 0x144   :  { %436 = vmatprep.subr.mxu1 %v478_v5 }
 0x145   :  { %437 = vmatpush3.msra.mxu1 %v237_v42 }
 0x146   :  { %438 = vmatprep.subr.mxu1 %v478_v5 }
 0x147   :  { %439 = vmatpush3.msra.mxu1 %v236_v43 }
 0x148   :  { %440 = vmatprep.subr.mxu1 %v478_v5 }
 0x149   :  { %441 = vmatpush3.msra.mxu1 %v235_v44 }
 0x14a   :  { %442 = vmatprep.subr.mxu1 %v478_v5 }
 0x14b   :  { %443 = vmatpush3.msra.mxu1 %v234_v45 }
 0x14c   :  { %444 = vmatprep.subr.mxu1 %v478_v5 }
 0x14d   :  { %445 = vmatpush3.msra.mxu1 %v233_v46 }
 0x1fe   :  { %v229_v48 = vpop.f32.mrf.mxu1 }
 0x1ff   :  { %v230_v49 = vadd.f32 %v337_v47, %v229_v48 }
 0x200   :  { %v429_v50 = vpop.f32.mrf.mxu1 }
 0x201   :  { %447 = vmatmul.mubr.msk.f32.vlgmr.msra.gmra.mxu1 %vm48_vm2, %v230_v49 }
 0x2c1   :  { %v317_v52 = vpop.f32.mrf.mxu1 }
 0x2c2   :  { %v318_v53 = vadd.f32 %v339_v51, %v317_v52 }
 0x2c3   :  { %v448_v54 = vpop.f32.mrf.mxu1 }
 0x2c4   :  { %321 = vst [vmem:[#allocation2] sm:$0x3] %v318_v53 }
 0x2c5   :  { %466 = shalt.err (!%p463_p4)
}
 0x2c6   :  { %331 = dma.vmem_to_hbm [thread:$0]  %s329_s30, 32, %s696_s8, [#allocation3]  }
 0x2c7   :  { %475 = dma.done.wait [#allocation3], 32  }
 0x2c8   :  { %476 = vsyncadd [#allocation3], 4294967264 }
 0x2c9   :  { %335 = vsyncpa [#allocation3], 1 }

// kernel: dissent_forward.2
= control target key start
LH: loop header
LB: loop body
LE: loop exit
PB: predicated region body
PF: predicated region fallthrough
CT: control target
= control target key end

     0   :  { %s4985_s0 = inlined_call_operand.vmem [shape: f32[2,16,32], index: 0, kind: input, shape index: {}]   ;;  %s4986_s1 = inlined_call_operand.vmem [shape: f32[2,16,16], index: 1, kind: input, shape index: {}]   ;;  %s4987_s2 = inlined_call_operand.vmem [shape: f32[2,2,16], index: 2, kind: input, shape index: {}]   ;;  %s4988_s3 = inlined_call_operand.vmem [shape: f32[2,1,32], index: 3, kind: input, shape index: {}]   ;;  %s4989_s4 = inlined_call_operand.vmem [shape: f32[2,1,32], index: 4, kind: input, shape index: {}]   ;;  %s4990_s5 = inlined_call_operand.vmem [shape: f32[2,32,96], index: 5, kind: input, shape index: {}]   ;;  %s4991_s6 = inlined_call_operand.vmem [shape: f32[2,1,96], index: 6, kind: input, shape index: {}]   ;;  %s4992_s7 = inlined_call_operand.vmem [shape: f32[2,32,32], index: 7, kind: input, shape index: {}]   ;;  %s4993_s8 = inlined_call_operand.vmem [shape: f32[2,1,32], index: 8, kind: input, shape index: {}]   ;;  %s4994_s9 = inlined_call_operand.vmem [shape: f32[2,1,32], index: 9, kind: input, shape index: {}]   ;;  %s4995_s10 = inlined_call_operand.vmem [shape: f32[2,1,32], index: 10, kind: input, shape index: {}]   ;;  %s4996_s11 = inlined_call_operand.vmem [shape: f32[2,32,64], index: 11, kind: input, shape index: {}]   ;;  %s4997_s12 = inlined_call_operand.vmem [shape: f32[2,1,64], index: 12, kind: input, shape index: {}]   ;;  %s4998_s13 = inlined_call_operand.vmem [shape: f32[2,64,32], index: 13, kind: input, shape index: {}]   ;;  %s4999_s14 = inlined_call_operand.vmem [shape: f32[2,1,32], index: 14, kind: input, shape index: {}]   ;;  %s5000_s15 = inlined_call_operand.vmem [shape: f32[1,32], index: 15, kind: input, shape index: {}]   ;;  %s5001_s16 = inlined_call_operand.vmem [shape: f32[1,32], index: 16, kind: input, shape index: {}]   ;;  %s5002_s17 = inlined_call_operand.vmem [shape: f32[32,128], index: 17, kind: input, shape index: {}]   ;;  %s5003_s18 = inlined_call_operand.vmem [shape: f32[1,128], index: 18, kind: input, shape index: {}]   ;;  %s5004_s19 = inlined_call_operand.vmem [shape: f32[2,2,32], index: 19, kind: output, shape index: {0}]   ;;  %s5005_s20 = inlined_call_operand.vmem [shape: f32[2,16,128], index: 20, kind: output, shape index: {1}]  }
   0x1   :  { %5034 = sst [smem:[#allocation2_spill]] %s4985_s0 }
   0x2   :  { %5035 = sst [smem:[#allocation3_spill]] %s4986_s1  ;;  %s4416_s1 = smov 0  }
   0x3   :  { %5036 = sst [smem:[#allocation4_spill]] %s4987_s2 }
   0x4   :  { %5037 = sst [smem:[#allocation5_spill]] %s4988_s3 }
   0x5   :  { %5038 = sst [smem:[#allocation6_spill]] %s4989_s4 }
   0x6 LB: > { %s3674_s22 = sadd.s32 4294967295, %s4293_s1   ;;  %p3678_p0 = scmp.ge.s32.totalorder %s4293_s1, 1  ;;  %s4293_s1 = sphi %s4416_s1, %s31_s1  }
   0x7   : > { %p584_p1 = scmp.lt.s32.totalorder %s4293_s1, 3 }
   0x9   : > { %p585_p2 = pnand %p3678_p0, %p584_p1 }
   0xa   : > { %p655_p3 = scmp.lt.s32.totalorder (!%p585_p2), %s3674_s22, 1  ;;  %s5039_s25 = sld [smem:[#allocation2_spill]] (!%p585_p2) }
   0xb   : > { %588 = sbr.rel (%p585_p2) target bundleno = 7684 (0x1e04), region = 96  ;;  %s5041_s27 = sld [smem:[#allocation6_spill]] (!%p585_p2) }
   0xc   : > { %s4295_s29 = smov (!%p585_p2), 96   ;;  %s5030_s30 = smov (!%p585_p2), 120  }
   0xd   : > { %s5028_s0 = smov (!%p585_p2), 88   ;;  %s5042_s2 = sld [smem:[#allocation3_spill]] (!%p585_p2) }
   0xe   : > { %s5026_s26 = smov (!%p585_p2), 64   ;;  %s5024_s28 = smov (!%p585_p2), 56  }
   0xf   : > { %s5022_s4 = smov (!%p585_p2), 80   ;;  %s5008_s21 = smov (!%p585_p2), 112  }
  0x10   : > { %s5058_s22 = smov (!%p655_p3, %s3674_s22), 1  ;;  %vm684_vm0 = vcmask 261120   ;;  %v731_v14 = vld [vmem:[%s4990_s5 + $0x18] sm:$0xff]  ;;  %v730_v15 = vld [vmem:[%s4990_s5 + $0x10] sm:$0xff]  ;;  %v729_v16 = vld [vmem:[%s4990_s5 + $0x8] sm:$0xff]  ;;  %vm826_vm1 = vcmask 64512  }
  0x11   : > { %s4427_s23 = sshll.u32 %s5058_s22, 4  ;;  %3935 = vmatprep.subr.mxu0 %v731_v14  ;;  %v728_v17 = vld [vmem:[%s4990_s5] sm:$0xff]  ;;  %vm914_vm2 = vcmask 130048   ;;  %s5014_s24 = smov 48   ;;  %vm1664_vm3 = vcmask 195584   ;;  %vm1909_vm4 = vcmask 523264  }
  0x12   : > { %s659_s3 = scalar_lea.vmem %s5039_s25, %s4427_s23  ;;  %3936 = vmatpush3.msra.mxu0 %v731_v14  ;;  %s5040_s25 = sld [smem:[#allocation5_spill]]  ;;  %v3688_v27 = vld [vmem:[%s5041_s27] ss:$0 sm:$0xff]  ;;  %vm4310_vm5 = vmmov 0   ;;  %vm3446_vm6 = vcmask 254976  }
  0x13   : > { %v4433_v0 = vld [vmem:[%s659_s3] sm:$0xff]  ;;  %v4437_v2 = vld [vmem:[%s659_s3 + $0x8] sm:$0xff]  ;;  %3937 = vmatprep.subr.mxu0 %v730_v15  ;;  %s4502_s3 = scalar_lea.vmem %s5042_s2, %s4427_s23  ;;  %s5012_s2 = smov 72  }
  0x14   : > { %v685_v1 = vsel %vm684_vm0, %v4433_v0, 0.0  ;;  %v688_v3 = vsel %vm684_vm0, %v4437_v2, 0.0  ;;  %3938 = vmatpush3.msra.mxu0 %v730_v15  ;;  %v3689_v34 = vld [vmem:[%s4991_s6] ss:$0 sm:$0xff]  ;;  %v4505_v45 = vld [vmem:[%s4502_s3 + $0x8] sm:$0xff] }
  0x15   : > { %686 = vadd.xlane.f32.xlu0 %v685_v1  ;;  %3939 = vmatprep.subr.mxu0 %v729_v16  ;;  %v4508_v48 = vld [vmem:[%s4502_s3] sm:$0xff] }
  0x16   : > { %3940 = vmatpush3.msra.mxu0 %v729_v16 }
  0x17   : > { %3941 = vmatprep.subr.mxu0 %v728_v17 }
  0x18   : > { %3942 = vmatpush3.msra.mxu0 %v728_v17  ;;  %v3687_v25 = vld [vmem:[%s5040_s25] ss:$0 sm:$0xff] }
  0x19   : > { %689 = vadd.xlane.f32.xlu0 %v688_v3 }
  0x9e   : > { %v687_v4 = vpop.xlane.xlu0 %686 }
  0x9f   : > { %v692_v5 = vmul.f32 0.03125, %v687_v4 }
  0xa1   : > { %v694_v6 = vsub.f32 %v4433_v0, %v692_v5 }
  0xa2   : > { %v690_v7 = vpop.xlane.xlu0 %689 }
  0xa3   : > { %v693_v8 = vmul.f32 0.03125, %v690_v7  ;;  %v696_v9 = vmul.f32 %v694_v6, %v694_v6 }
  0xa5   : > { %v695_v10 = vsub.f32 %v4437_v2, %v693_v8  ;;  %v698_v11 = vsel %vm684_vm0, %v696_v9, 0.0 }
  0xa6   : > { %699 = vadd.xlane.f32.xlu1 %v698_v11 }
  0xa7   : > { %v697_v12 = vmul.f32 %v695_v10, %v695_v10 }
  0xa9   : > { %v701_v13 = vsel %vm684_vm0, %v697_v12, 0.0 }
  0xaa   : > { %702 = vadd.xlane.f32.xlu1 %v701_v13 }
 0x12f   : > { %v700_v18 = vpop.xlane.xlu1 %699 }
 0x130   : > { %v704_v19 = vmul.f32 0.03125, %v700_v18 }
 0x132   : > { %v706_v20 = vadd.f32 1e-06, %v704_v19 }
 0x133   : > { %v703_v21 = vpop.xlane.xlu1 %702 }
 0x134   : > { %4193 = vrsqrt.f32 %v706_v20  ;;  %v705_v22 = vmul.f32 0.03125, %v703_v21 }
 0x136   : > { %v707_v23 = vadd.f32 1e-06, %v705_v22 }
 0x138   : > { %4195 = vrsqrt.f32 %v707_v23 }
 0x141   : > { %v4194_v24 = vpop.eup %4193 }
 0x142   : > { %v710_v26 = vmul.f32 %v4194_v24, %v694_v6 }
 0x144   : > { %v718_v28 = vmul.f32 %v3687_v25, %v710_v26 }
 0x145   : > { %v4196_v29 = vpop.eup %4195 }
 0x146   : > { %v711_v30 = vmul.f32 %v4196_v29, %v695_v10  ;;  %v726_v31 = vadd.f32 %v3688_v27, %v718_v28 }
 0x148   : > { %v719_v32 = vmul.f32 %v3687_v25, %v711_v30  ;;  %3943 = vmatprep.mubr.msk.f32.mxu0 %vm684_vm0, %v726_v31 }
 0x14a   : > { %v727_v33 = vadd.f32 %v3688_v27, %v719_v32 }
 0x14c   : > { %3944 = vmatmul.mubr.msk.f32.vlgmr.msra.gmra.mxu0 %vm684_vm0, %v727_v33 }
 0x20c   : > { %v3945_v35 = vpop.f32.mrf.mxu0 }
 0x20d   : > { %v4468_v36 = vadd.f32 %v3945_v35, %v3689_v34 }
 0x20e   : > { %v811_v37 = vpop.f32.mrf.mxu0 }
 0x20f   : > { %v4470_v38 = vadd.f32 %v3689_v34, %v811_v37  ;;  %824 = vrot.lane.b32.xlu0 %v4468_v36, %s4295_s29 }
 0x211   : > { %822 = vrot.lane.b32.xlu1 %v4470_v38, %s4295_s29  ;;  %3950 = vmatprep.mubr.msk.f32.mxu1 %vm826_vm1, %v4470_v38 }
 0x213   : > { %1024 = vrot.lane.b32.xlu0 %v4470_v38, %s5030_s30 }
 0x215   : > { %1030 = vrot.lane.b32.xlu1 %v4468_v36, %s5028_s0 }
 0x219   : > { %1028 = vrot.lane.b32.xlu1 %v4470_v38, %s5028_s0  ;;  %s5044_s0 = smov 88  }
 0x21d   : > { %1026 = vrot.lane.b32.xlu1 %v4468_v36, %s5030_s30  ;;  %s5051_s30 = smov 104  }
 0x281   : > { %v825_v39 = vpop.permute.xlu0 %824 }
 0x282   : > { %3946 = vmatprep.subr.msk.mxu1 %vm826_vm1, %v825_v39 }
 0x283   : > { %3947 = vmatpush3.xpose.msk.msra.mxu1 %vm826_vm1, %v825_v39  ;;  %v823_v40 = vpop.permute.xlu1 %822 }
 0x284   : > { %3948 = vmatprep.subr.msk.mxu1 %vm826_vm1, %v823_v40 }
 0x285   : > { %v1025_v42 = vpop.permute.xlu0 %1024 }
 0x287   : > { %3949 = vmatpush3.xpose.msk.msra.mxu1 %vm826_vm1, %v823_v40  ;;  %v1031_v41 = vpop.permute.xlu1 %1030 }
 0x288   : > { %3960 = vmatprep.subr.msk.mxu1 %vm826_vm1, %v1031_v41 }
 0x28a   : > { %3951 = vmatmul.mubr.msk.f32.vlgmr.msra.gmra.mxu1 %vm826_vm1, %v4468_v36 }
 0x28b   : > { %v1029_v43 = vpop.permute.xlu1 %1028  ;;  %3961 = vmatpush3.xpose.msk.msra.mxu1 %vm826_vm1, %v1031_v41  ;;  %3964 = vmatprep.mubr.msk.f32.mxu1 %vm826_vm1, %v1025_v42 }
 0x28c   : > { %3962 = vmatprep.subr.msk.mxu1 %vm826_vm1, %v1029_v43 }
 0x28f   : > { %3963 = vmatpush3.xpose.msk.msra.mxu1 %vm826_vm1, %v1029_v43  ;;  %v1027_v44 = vpop.permute.xlu1 %1026 }
 0x292   : > { %3965 = vmatmul.mubr.msk.f32.vlgmr.msra.gmra.mxu1 %vm826_vm1, %v1027_v44 }
 0x34a   : > { %v3952_v46 = vpop.f32.mrf.mxu1 }
 0x34b   : > { %v911_v47 = vmul.f32 0.35355338, %v3952_v46 }
 0x34c   : > { %v901_v49 = vpop.f32.mrf.mxu1 }
 0x34d   : > { %v910_v50 = vmul.f32 0.35355338, %v901_v49  ;;  %v913_v51 = vadd.f32 %v911_v47, %v4505_v45 }
 0x34f   : > { %v918_v52 = vsel %vm914_vm2, %v913_v51, -inf  ;;  %v912_v53 = vadd.f32 %v910_v50, %v4508_v48 }
 0x350   : > { %919 = vmax.xlane.f32.xlu1 %v918_v52 }
 0x351   : > { %v915_v54 = vsel %vm914_vm2, %v912_v53, -inf }
 0x352   : > { %v3966_v55 = vpop.f32.mrf.mxu1  ;;  %916 = vmax.xlane.f32.xlu0 %v915_v54 }
 0x353   : > { %v1116_v57 = vmul.f32 0.35355338, %v3966_v55 }
 0x354   : > { %v1106_v56 = vpop.f32.mrf.mxu1 }
 0x355   : > { %v1115_v58 = vmul.f32 0.35355338, %v1106_v56  ;;  %v1118_v61 = vadd.f32 %v1116_v57, %v4505_v45 }
 0x357   : > { %v1117_v59 = vadd.f32 %v1115_v58, %v4508_v48  ;;  %v1122_v62 = vsel %vm914_vm2, %v1118_v61, -inf }
 0x359   : > { %v1119_v60 = vsel %vm914_vm2, %v1117_v59, -inf }
 0x35a   : > { %1120 = vmax.xlane.f32.xlu0 %v1119_v60 }
 0x35e   : > { %1123 = vmax.xlane.f32.xlu0 %v1122_v62 }
 0x361   : > { %937 = vrot.lane.b32.xlu1 %v4470_v38, %s5026_s26 }
 0x365   : > { %1143 = vrot.lane.b32.xlu1 %v4468_v36, %s5024_s28 }
 0x369   : > { %1141 = vrot.lane.b32.xlu1 %v4470_v38, %s5024_s28  ;;  %s5047_s28 = smov 80  }
 0x374   : > { %939 = vrot.lane.b32.xlu0 %v4468_v36, %s5026_s26  ;;  %s5046_s26 = smov 56  }
 0x3d9   : > { %v920_v63 = vpop.xlane.xlu1 %919 }
 0x3da   : > { %v922_v1 = vsub.f32 %v913_v51, %v920_v63 }
 0x3db   : > { %v917_v3 = vpop.xlane.xlu0 %916 }
 0x3dc   : > { %v925_v4 = vmul.f32 1.442695, %v922_v1  ;;  %v921_v5 = vsub.f32 %v912_v53, %v917_v3 }
 0x3dd   : > { %v938_v12 = vpop.permute.xlu1 %937 }
 0x3de   : > { %4197 = vpow2.f32 %v925_v4  ;;  %v923_v6 = vmul.f32 1.442695, %v921_v5 }
 0x3e0   : > { %4199 = vpow2.f32 %v923_v6 }
 0x3e1   : > { %v1144_v19 = vpop.permute.xlu1 %1143 }
 0x3e3   : > { %v1121_v7 = vpop.xlane.xlu0 %1120 }
 0x3e4   : > { %v1125_v8 = vsub.f32 %v1117_v59, %v1121_v7 }
 0x3e5   : > { %v1142_v24 = vpop.permute.xlu1 %1141 }
 0x3e6   : > { %v1127_v9 = vmul.f32 1.442695, %v1125_v8 }
 0x3e7   : > { %v1124_v10 = vpop.xlane.xlu0 %1123 }
 0x3e8   : > { %4201 = vpow2.f32 %v1127_v9  ;;  %v1126_v11 = vsub.f32 %v1118_v61, %v1124_v10 }
 0x3ea   : > { %v1129_v13 = vmul.f32 1.442695, %v1126_v11 }
 0x3eb   : > { %v4198_v14 = vpop.eup %4197  ;;  %v940_v15 = vpop.permute.xlu0 %939 }
 0x3ec   : > { %4203 = vpow2.f32 %v1129_v13  ;;  %3953 = vmatprep.subr.mxu0 %v940_v15  ;;  %v930_v16 = vsel %vm914_vm2, %v4198_v14, 0.0 }
 0x3ed   : > { %v4200_v17 = vpop.eup %4199  ;;  %931 = vadd.xlane.f32.xlu1 %v930_v16  ;;  %3954 = vmatpush3.msra.mxu0 %v940_v15 }
 0x3ee   : > { %3955 = vmatprep.subr.mxu0 %v938_v12  ;;  %v927_v18 = vsel %vm914_vm2, %v4200_v17, 0.0 }
 0x3ef   : > { %928 = vadd.xlane.f32.xlu0 %v927_v18  ;;  %3956 = vmatpush3.msra.mxu0 %v938_v12 }
 0x3f0   : > { %3967 = vmatprep.subr.mxu0 %v1144_v19 }
 0x3f5   : > { %v4202_v20 = vpop.eup %4201 }
 0x3f6   : > { %v1131_v21 = vsel %vm914_vm2, %v4202_v20, 0.0 }
 0x3f7   : > { %1132 = vadd.xlane.f32.xlu0 %v1131_v21 }
 0x3f9   : > { %v4204_v22 = vpop.eup %4203 }
 0x3fa   : > { %v1134_v23 = vsel %vm914_vm2, %v4204_v22, 0.0 }
 0x3fb   : > { %1135 = vadd.xlane.f32.xlu1 %v1134_v23 }
 0x40c   : > { %1232 = vrot.lane.b32.xlu1 %v4470_v38, %s5022_s4 }
 0x40d   : > { %1234 = vrot.lane.b32.xlu0 %v4468_v36, %s5022_s4  ;;  %s5048_s4 = smov 112  }
 0x410   : > { %1230 = vrot.lane.b32.xlu1 %v4468_v36, %s5008_s21 }
 0x411   : > { %1228 = vrot.lane.b32.xlu0 %v4470_v38, %s5008_s21  ;;  %s5010_s21 = smov 104  }
 0x476   : > { %v932_v25 = vpop.xlane.xlu1 %931 }
 0x477   : > { %4205 = vrcp.f32 %v932_v25 }
 0x478   : > { %v929_v26 = vpop.xlane.xlu0 %928 }
 0x479   : > { %4207 = vrcp.f32 %v929_v26 }
 0x480   : > { %v1133_v27 = vpop.xlane.xlu0 %1132 }
 0x481   : > { %4209 = vrcp.f32 %v1133_v27 }
 0x484   : > { %v1136_v28 = vpop.xlane.xlu1 %1135  ;;  %v4206_v29 = vpop.eup %4205 }
 0x485   : > { %4211 = vrcp.f32 %v1136_v28  ;;  %v936_v32 = vmul.f32 %v4206_v29, %v4198_v14  ;;  %v1235_v33 = vpop.permute.xlu0 %1234 }
 0x486   : > { %v4208_v30 = vpop.eup %4207 }
 0x487   : > { %v934_v31 = vmul.f32 %v4208_v30, %v4200_v17 }
 0x488   : > { %v1233_v41 = vpop.permute.xlu1 %1232 }
 0x489   : > { %3957 = vmatprep.mubr.msk.f32.mxu0 %vm914_vm2, %v934_v31  ;;  %v1229_v40 = vpop.permute.xlu0 %1228 }
 0x48a   : > { %3958 = vmatmul.mubr.msk.f32.vlgmr.msra.gmra.mxu0 %vm914_vm2, %v936_v32 }
 0x48b   : > { %3968 = vmatpush3.msra.mxu0 %v1144_v19 }
 0x48c   : > { %3969 = vmatprep.subr.mxu0 %v1142_v24  ;;  %v1231_v42 = vpop.permute.xlu1 %1230 }
 0x48d   : > { %3970 = vmatpush3.msra.mxu0 %v1142_v24 }
 0x48e   : > { %v4210_v34 = vpop.eup %4209  ;;  %3974 = vmatprep.subr.msk.mxu0 %vm826_vm1, %v1235_v33 }
 0x48f   : > { %v1138_v35 = vmul.f32 %v4210_v34, %v4202_v20 }
 0x491   : > { %3971 = vmatprep.mubr.msk.f32.mxu0 %vm914_vm2, %v1138_v35 }
 0x492   : > { %v4212_v37 = vpop.eup %4211 }
 0x493   : > { %v1140_v39 = vmul.f32 %v4212_v37, %v4204_v22 }
 0x495   : > { %3972 = vmatmul.mubr.msk.f32.vlgmr.msra.gmra.mxu0 %vm914_vm2, %v1140_v39 }
 0x496   : > { %3975 = vmatpush3.xpose.msk.msra.mxu0 %vm826_vm1, %v1235_v33  ;;  %3978 = vmatprep.mubr.msk.f32.mxu0 %vm826_vm1, %v1229_v40 }
 0x497   : > { %3976 = vmatprep.subr.msk.mxu0 %vm826_vm1, %v1233_v41 }
 0x49a   : > { %3977 = vmatpush3.xpose.msk.msra.mxu0 %vm826_vm1, %v1233_v41 }
 0x49d   : > { %3979 = vmatmul.mubr.msk.f32.vlgmr.msra.gmra.mxu0 %vm826_vm1, %v1231_v42 }
 0x54a   : > { %v4548_v43 = vpop.f32.mrf.mxu0 }
 0x54c   : > { %v4550_v44 = vpop.f32.mrf.mxu0 }
 0x555   : > { %v4552_v46 = vpop.f32.mrf.mxu0 }
 0x557   : > { %v4554_v47 = vpop.f32.mrf.mxu0 }
 0x55d   : > { %v3980_v49 = vpop.f32.mrf.mxu0 }
 0x55e   : > { %v1320_v50 = vmul.f32 0.35355338, %v3980_v49 }
 0x55f   : > { %v1310_v51 = vpop.f32.mrf.mxu0 }
 0x560   : > { %v1319_v52 = vmul.f32 0.35355338, %v1310_v51  ;;  %v1322_v53 = vadd.f32 %v1320_v50, %v4505_v45  ;;  %v1669_v50 = vld [vmem:[%s4992_s7 + $0x10] sm:$0xff]  ;;  %v1668_v51 = vld [vmem:[%s4992_s7 + $0x8] sm:$0xff] }
 0x562   : > { %v1326_v54 = vsel %vm914_vm2, %v1322_v53, -inf  ;;  %v1321_v55 = vadd.f32 %v1319_v52, %v4508_v48  ;;  %v1667_v52 = vld [vmem:[%s4992_s7] sm:$0xff] }
 0x563   : > { %1327 = vmax.xlane.f32.xlu1 %v1326_v54 }
 0x564   : > { %v1323_v56 = vsel %vm914_vm2, %v1321_v55, -inf }
 0x565   : > { %1324 = vmax.xlane.f32.xlu0 %v1323_v56 }
 0x574   : > { %1345 = vrot.lane.b32.xlu1 %v4470_v38, %s5014_s24 }
 0x578   : > { %1438 = vrot.lane.b32.xlu1 %v4468_v36, %s5012_s2 }
 0x57c   : > { %1436 = vrot.lane.b32.xlu1 %v4470_v38, %s5012_s2  ;;  %s5016_s2 = smov 8  }
 0x580   : > { %1434 = vrot.lane.b32.xlu1 %v4468_v36, %s5010_s21 }
 0x5ec   : > { %v1328_v57 = vpop.xlane.xlu1 %1327 }
 0x5ed   : > { %v1330_v58 = vsub.f32 %v1322_v53, %v1328_v57 }
 0x5ee   : > { %v1325_v59 = vpop.xlane.xlu0 %1324 }
 0x5ef   : > { %v1333_v60 = vmul.f32 1.442695, %v1330_v58  ;;  %v1329_v61 = vsub.f32 %v1321_v55, %v1325_v59 }
 0x5f0   : > { %v1346_v7 = vpop.permute.xlu1 %1345 }
 0x5f1   : > { %4213 = vpow2.f32 %v1333_v60  ;;  %v1331_v62 = vmul.f32 1.442695, %v1329_v61 }
 0x5f3   : > { %4215 = vpow2.f32 %v1331_v62 }
 0x5f4   : > { %v1439_v9 = vpop.permute.xlu1 %1438 }
 0x5f8   : > { %v1437_v15 = vpop.permute.xlu1 %1436 }
 0x5fc   : > { %v1435_v16 = vpop.permute.xlu1 %1434 }
 0x5fe   : > { %v4214_v63 = vpop.eup %4213 }
 0x5ff   : > { %v1338_v1 = vsel %vm914_vm2, %v4214_v63, 0.0 }
 0x600   : > { %v4216_v3 = vpop.eup %4215  ;;  %1339 = vadd.xlane.f32.xlu0 %v1338_v1 }
 0x601   : > { %v1335_v4 = vsel %vm914_vm2, %v4216_v3, 0.0 }
 0x604   : > { %1336 = vadd.xlane.f32.xlu0 %v1335_v4 }
 0x61a   : > { %1347 = vrot.lane.b32.xlu0 %v4468_v36, %s5014_s24  ;;  %s5018_s24 = smov 16  }
 0x61e   : > { %1432 = vrot.lane.b32.xlu0 %v4470_v38, %s5010_s21  ;;  %s5020_s21 = smov 40  }
 0x689   : > { %v1340_v5 = vpop.xlane.xlu0 %1339 }
 0x68a   : > { %4217 = vrcp.f32 %v1340_v5 }
 0x68d   : > { %v1337_v6 = vpop.xlane.xlu0 %1336 }
 0x68e   : > { %4219 = vrcp.f32 %v1337_v6 }
 0x691   : > { %v1348_v8 = vpop.permute.xlu0 %1347 }
 0x692   : > { %3981 = vmatprep.subr.mxu1 %v1348_v8 }
 0x693   : > { %3982 = vmatpush3.msra.mxu1 %v1348_v8 }
 0x694   : > { %3983 = vmatprep.subr.mxu1 %v1346_v7 }
 0x695   : > { %3984 = vmatpush3.msra.mxu1 %v1346_v7  ;;  %v1433_v14 = vpop.permute.xlu0 %1432 }
 0x696   : > { %3988 = vmatprep.subr.msk.mxu1 %vm826_vm1, %v1439_v9 }
 0x697   : > { %v4218_v10 = vpop.eup %4217 }
 0x698   : > { %v1344_v13 = vmul.f32 %v4218_v10, %v4214_v63 }
 0x69b   : > { %v4220_v11 = vpop.eup %4219 }
 0x69c   : > { %v1342_v12 = vmul.f32 %v4220_v11, %v4216_v3 }
 0x69e   : > { %3985 = vmatprep.mubr.msk.f32.mxu1 %vm914_vm2, %v1342_v12 }
 0x69f   : > { %3986 = vmatmul.mubr.msk.f32.vlgmr.msra.gmra.mxu1 %vm914_vm2, %v1344_v13 }
 0x6a0   : > { %3989 = vmatpush3.xpose.msk.msra.mxu1 %vm826_vm1, %v1439_v9  ;;  %3992 = vmatprep.mubr.msk.f32.mxu1 %vm826_vm1, %v1433_v14 }
 0x6a1   : > { %3990 = vmatprep.subr.msk.mxu1 %vm826_vm1, %v1437_v15 }
 0x6a4   : > { %3991 = vmatpush3.xpose.msk.msra.mxu1 %vm826_vm1, %v1437_v15 }
 0x6a7   : > { %3993 = vmatmul.mubr.msk.f32.vlgmr.msra.gmra.mxu1 %vm826_vm1, %v1435_v16 }
 0x75f   : > { %v3987_v17 = vpop.f32.mrf.mxu1 }
 0x761   : > { %v1423_v18 = vpop.f32.mrf.mxu1 }
 0x767   : > { %v3994_v19 = vpop.f32.mrf.mxu1 }
 0x768   : > { %v1524_v20 = vmul.f32 0.35355338, %v3994_v19 }
 0x769   : > { %v1514_v21 = vpop.f32.mrf.mxu1 }
 0x76a   : > { %v1523_v22 = vmul.f32 0.35355338, %v1514_v21  ;;  %v1526_v23 = vadd.f32 %v1524_v20, %v4505_v45  ;;  %v1810_v20 = vld [vmem:[%s4996_s11 + $0x18] sm:$0xff]  ;;  %v1809_v21 = vld [vmem:[%s4996_s11 + $0x10] sm:$0xff] }
 0x76b   : > { %4013 = vmatprep.subr.mxu1 %v1810_v20 }
 0x76c   : > { %v1530_v24 = vsel %vm914_vm2, %v1526_v23, -inf  ;;  %v1525_v25 = vadd.f32 %v1523_v22, %v4508_v48  ;;  %4014 = vmatpush3.msra.mxu1 %v1810_v20  ;;  %v1808_v22 = vld [vmem:[%s4996_s11 + $0x8] sm:$0xff] }
 0x76d   : > { %1531 = vmax.xlane.f32.xlu1 %v1530_v24  ;;  %4015 = vmatprep.subr.mxu1 %v1809_v21  ;;  %v1908_v24 = vld [vmem:[%s4998_s13 + $0x38] sm:$0xff] }
 0x76e   : > { %v1527_v26 = vsel %vm914_vm2, %v1525_v25, -inf  ;;  %4016 = vmatpush3.msra.mxu1 %v1809_v21 }
 0x76f   : > { %1528 = vmax.xlane.f32.xlu0 %v1527_v26  ;;  %4017 = vmatprep.subr.mxu1 %v1808_v22  ;;  %v1906_v26 = vld [vmem:[%s4998_s13 + $0x28] sm:$0xff] }
 0x770   : > { %4018 = vmatpush3.msra.mxu1 %v1808_v22 }
 0x77e   : > { %1549 = vrot.lane.b32.xlu1 %v4470_v38, %s5020_s21 }
 0x782   : > { %1638 = vrot.lane.b32.xlu1 %v4554_v47, %s5016_s2 }
 0x786   : > { %1640 = vrot.lane.b32.xlu1 %v4552_v46, %s5016_s2  ;;  %s5050_s2 = smov 72  }
 0x78a   : > { %1648 = vrot.lane.b32.xlu1 %v3987_v17, %s5018_s24 }
 0x7f6   : > { %v1532_v27 = vpop.xlane.xlu1 %1531 }
 0x7f7   : > { %v1534_v28 = vsub.f32 %v1526_v23, %v1532_v27  ;;  %v1807_v23 = vld [vmem:[%s4996_s11] sm:$0xff] }
 0x7f8   : > { %v1529_v29 = vpop.xlane.xlu0 %1528  ;;  %4019 = vmatprep.subr.mxu1 %v1807_v23  ;;  %v1905_v27 = vld [vmem:[%s4998_s13 + $0x20] sm:$0xff] }
 0x7f9   : > { %v1537_v30 = vmul.f32 1.442695, %v1534_v28  ;;  %v1533_v31 = vsub.f32 %v1525_v25, %v1529_v29  ;;  %4020 = vmatpush3.msra.mxu1 %v1807_v23  ;;  %v1907_v25 = vld [vmem:[%s4998_s13 + $0x30] sm:$0xff]  ;;  %v3729_v23 = vld [vmem:[%s5040_s25 + $0x1] ss:$0 sm:$0xff] }
 0x7fa   : > { %v1550_v41 = vpop.permute.xlu1 %1549 }
 0x7fb   : > { %4221 = vpow2.f32 %v1537_v30  ;;  %v1535_v32 = vmul.f32 1.442695, %v1533_v31 }
 0x7fd   : > { %4223 = vpow2.f32 %v1535_v32 }
 0x7fe   : > { %v1639_v55 = vpop.permute.xlu1 %1638 }
 0x7ff   : > { %v1660_v59 = vsel %vm826_vm1, %v4550_v44, %v1639_v55  ;;  %v3718_v44 = vld [vmem:[%s4993_s8] ss:$0 sm:$0xff] }
 0x802   : > { %v1641_v56 = vpop.permute.xlu1 %1640 }
 0x803   : > { %v1661_v61 = vsel %vm826_vm1, %v4548_v43, %v1641_v56 }
 0x806   : > { %v1649_v57 = vpop.permute.xlu1 %1648 }
 0x807   : > { %v1663_v1 = vsel %vm914_vm2, %v1661_v61, %v1649_v57 }
 0x808   : > { %v4222_v33 = vpop.eup %4221 }
 0x809   : > { %v1542_v38 = vsel %vm914_vm2, %v4222_v33, 0.0 }
 0x80a   : > { %v4224_v34 = vpop.eup %4223  ;;  %1543 = vadd.xlane.f32.xlu0 %v1542_v38 }
 0x80b   : > { %v1539_v35 = vsel %vm914_vm2, %v4224_v34, 0.0 }
 0x80e   : > { %1540 = vadd.xlane.f32.xlu0 %v1539_v35 }
 0x824   : > { %1551 = vrot.lane.b32.xlu0 %v4468_v36, %s5020_s21  ;;  %v1670_v36 = vld [vmem:[%s4992_s7 + $0x18] sm:$0xff]  ;;  %s5049_s21 = smov 48  }
 0x828   : > { %1646 = vrot.lane.b32.xlu0 %v1423_v18, %s5018_s24  ;;  %s5032_s24 = smov 24  }
 0x893   : > { %v1544_v37 = vpop.xlane.xlu0 %1543 }
 0x894   : > { %4225 = vrcp.f32 %v1544_v37  ;;  %v3720_v37 = vld [vmem:[%s4995_s10] ss:$0 sm:$0xff] }
 0x897   : > { %v1541_v39 = vpop.xlane.xlu0 %1540 }
 0x898   : > { %4227 = vrcp.f32 %v1541_v39 }
 0x89b   : > { %v1552_v40 = vpop.permute.xlu0 %1551 }
 0x89c   : > { %3995 = vmatprep.subr.mxu0 %v1552_v40 }
 0x89d   : > { %3996 = vmatpush3.msra.mxu0 %v1552_v40 }
 0x89e   : > { %3997 = vmatprep.subr.mxu0 %v1550_v41 }
 0x89f   : > { %3998 = vmatpush3.msra.mxu0 %v1550_v41  ;;  %v1647_v58 = vpop.permute.xlu0 %1646 }
 0x8a0   : > { %4002 = vmatprep.subr.mxu0 %v1670_v36  ;;  %v1662_v62 = vsel %vm914_vm2, %v1660_v59, %v1647_v58 }
 0x8a1   : > { %v4226_v42 = vpop.eup %4225 }
 0x8a2   : > { %v1548_v49 = vmul.f32 %v4226_v42, %v4222_v33 }
 0x8a5   : > { %v4228_v46 = vpop.eup %4227 }
 0x8a6   : > { %v1546_v47 = vmul.f32 %v4228_v46, %v4224_v34  ;;  %v3719_v34 = vld [vmem:[%s4994_s9] ss:$0 sm:$0xff] }
 0x8a8   : > { %3999 = vmatprep.mubr.msk.f32.mxu0 %vm914_vm2, %v1546_v47 }
 0x8a9   : > { %4000 = vmatmul.mubr.msk.f32.vlgmr.msra.gmra.mxu0 %vm914_vm2, %v1548_v49  ;;  %v1904_v49 = vld [vmem:[%s4998_s13 + $0x18] sm:$0xff] }
 0x8aa   : > { %4003 = vmatpush3.msra.mxu0 %v1670_v36  ;;  %v1903_v36 = vld [vmem:[%s4998_s13 + $0x10] sm:$0xff] }
 0x8ab   : > { %4004 = vmatprep.subr.mxu0 %v1669_v50 }
 0x8ac   : > { %4005 = vmatpush3.msra.mxu0 %v1669_v50  ;;  %v1902_v50 = vld [vmem:[%s4998_s13 + $0x8] sm:$0xff] }
 0x8ad   : > { %4006 = vmatprep.subr.mxu0 %v1668_v51 }
 0x8ae   : > { %4007 = vmatpush3.msra.mxu0 %v1668_v51  ;;  %v1901_v51 = vld [vmem:[%s4998_s13] sm:$0xff] }
 0x8af   : > { %4008 = vmatprep.subr.mxu0 %v1667_v52 }
 0x8b0   : > { %4009 = vmatpush3.msra.mxu0 %v1667_v52  ;;  %v3721_v52 = vld [vmem:[%s4997_s12] ss:$0 sm:$0xff] }
 0x8b1   : > { %4024 = vmatprep.subr.mxu0 %v1908_v24 }
 0x969   : > { %v4001_v53 = vpop.f32.mrf.mxu0 }
 0x96a   : > { %1656 = vrot.lane.b32.xlu1 %v4001_v53, %s5032_s24 }
 0x96b   : > { %v1627_v54 = vpop.f32.mrf.mxu0 }
 0x96c   : > { %1654 = vrot.lane.b32.xlu0 %v1627_v54, %s5032_s24  ;;  %s5043_s24 = smov 120  }
 0x9dc   : > { %v1657_v60 = vpop.permute.xlu1 %1656 }
 0x9dd   : > { %v1666_v4 = vsel %vm1664_vm3, %v1663_v1, %v1657_v60  ;;  %v3726_v60 = vld [vmem:[%s4999_s14] ss:$0 sm:$0xff] }
 0x9de   : > { %v1655_v63 = vpop.permute.xlu0 %1654 }
 0x9df   : > { %v1665_v3 = vsel %vm1664_vm3, %v1662_v62, %v1655_v63 }
 0x9e0   : > { %4010 = vmatprep.mubr.msk.f32.mxu0 %vm684_vm0, %v1665_v3 }
 0x9e1   : > { %4011 = vmatmul.mubr.msk.f32.vlgmr.msra.gmra.mxu0 %vm684_vm0, %v1666_v4 }
 0x9e2   : > { %4025 = vmatpush3.msra.mxu0 %v1908_v24 }
 0x9e3   : > { %4026 = vmatprep.subr.mxu0 %v1907_v25 }
 0x9e4   : > { %4027 = vmatpush3.msra.mxu0 %v1907_v25 }
 0x9e5   : > { %4028 = vmatprep.subr.mxu0 %v1906_v26 }
 0x9e6   : > { %4029 = vmatpush3.msra.mxu0 %v1906_v26 }
 0x9e7   : > { %4030 = vmatprep.subr.mxu0 %v1905_v27 }
 0x9e8   : > { %4031 = vmatpush3.msra.mxu0 %v1905_v27 }
 0x9e9   : > { %4032 = vmatprep.subr.mxu0 %v1904_v49 }
 0x9ea   : > { %4033 = vmatpush3.msra.mxu0 %v1904_v49 }
 0x9eb   : > { %4034 = vmatprep.subr.mxu0 %v1903_v36 }
 0x9ec   : > { %4035 = vmatpush3.msra.mxu0 %v1903_v36 }
 0x9ed   : > { %4036 = vmatprep.subr.mxu0 %v1902_v50 }
 0x9ee   : > { %4037 = vmatpush3.msra.mxu0 %v1902_v50 }
 0x9ef   : > { %4038 = vmatprep.subr.mxu0 %v1901_v51 }
 0x9f0   : > { %4039 = vmatpush3.msra.mxu0 %v1901_v51 }
 0xaa1   : > { %v4012_v5 = vpop.f32.mrf.mxu0 }
 0xaa2   : > { %v1753_v43 = vadd.f32 %v4012_v5, %v4437_v2 }
 0xaa3   : > { %v1743_v6 = vpop.f32.mrf.mxu0 }
 0xaa4   : > { %v4628_v7 = vadd.f32 %v3718_v44, %v1753_v43  ;;  %v1752_v8 = vadd.f32 %v1743_v6, %v4433_v0 }
 0xaa6   : > { %v4631_v9 = vadd.f32 %v3718_v44, %v1752_v8  ;;  %v1768_v10 = vsel %vm684_vm0, %v4628_v7, 0.0 }
 0xaa7   : > { %1769 = vadd.xlane.f32.xlu1 %v1768_v10 }
 0xaa8   : > { %v1765_v11 = vsel %vm684_vm0, %v4631_v9, 0.0 }
 0xaa9   : > { %1766 = vadd.xlane.f32.xlu0 %v1765_v11 }
 0xb30   : > { %v1770_v12 = vpop.xlane.xlu1 %1769 }
 0xb31   : > { %v1772_v13 = vmul.f32 0.03125, %v1770_v12 }
 0xb32   : > { %v1767_v14 = vpop.xlane.xlu0 %1766 }
 0xb33   : > { %v1771_v15 = vmul.f32 0.03125, %v1767_v14  ;;  %v1774_v2 = vsub.f32 %v4628_v7, %v1772_v13  ;;  %v3734_v14 = vld [vmem:[%s4990_s5 + $0x38] sm:$0xff] }
 0xb34   : > { %4043 = vmatprep.subr.mxu1 %v3734_v14 }
 0xb35   : > { %v1773_v16 = vsub.f32 %v4631_v9, %v1771_v15  ;;  %v1776_v18 = vmul.f32 %v1774_v2, %v1774_v2  ;;  %v3733_v15 = vld [vmem:[%s4990_s5 + $0x30] sm:$0xff] }
 0xb37   : > { %v1775_v17 = vmul.f32 %v1773_v16, %v1773_v16  ;;  %v1780_v19 = vsel %vm684_vm0, %v1776_v18, 0.0 }
 0xb39   : > { %v1777_v0 = vsel %vm684_vm0, %v1775_v17, 0.0 }
 0xb3a   : > { %1778 = vadd.xlane.f32.xlu0 %v1777_v0 }
 0xb3e   : > { %1781 = vadd.xlane.f32.xlu0 %v1780_v19 }
 0xbc3   : > { %v1779_v28 = vpop.xlane.xlu0 %1778 }
 0xbc4   : > { %v1783_v29 = vmul.f32 0.03125, %v1779_v28  ;;  %v3730_v28 = vld [vmem:[%s5041_s27 + $0x1] ss:$0 sm:$0xff] }
 0xbc6   : > { %v1785_v30 = vadd.f32 1e-06, %v1783_v29 }
 0xbc7   : > { %v1782_v31 = vpop.xlane.xlu0 %1781 }
 0xbc8   : > { %4229 = vrsqrt.f32 %v1785_v30  ;;  %v1784_v32 = vmul.f32 0.03125, %v1782_v31 }
 0xbca   : > { %v1786_v33 = vadd.f32 1e-06, %v1784_v32  ;;  %v3736_v32 = vld [vmem:[%s4991_s6 + $0x1] ss:$0 sm:$0xff] }
 0xbcc   : > { %4231 = vrsqrt.f32 %v1786_v33 }
 0xbd5   : > { %v4230_v38 = vpop.eup %4229 }
 0xbd6   : > { %v1789_v35 = vmul.f32 %v4230_v38, %v1773_v16  ;;  %v3731_v16 = vld [vmem:[%s4990_s5 + $0x20] sm:$0xff] }
 0xbd8   : > { %v1797_v39 = vmul.f32 %v3719_v34, %v1789_v35 }
 0xbd9   : > { %v4232_v40 = vpop.eup %4231 }
 0xbda   : > { %v1790_v41 = vmul.f32 %v4232_v40, %v1774_v2  ;;  %v1805_v42 = vadd.f32 %v3720_v37, %v1797_v39  ;;  %v3732_v2 = vld [vmem:[%s4990_s5 + $0x28] sm:$0xff] }
 0xbdc   : > { %v1798_v46 = vmul.f32 %v3719_v34, %v1790_v41  ;;  %4021 = vmatprep.mubr.msk.f32.mxu1 %vm684_vm0, %v1805_v42 }
 0xbde   : > { %v1806_v47 = vadd.f32 %v3720_v37, %v1798_v46 }
 0xbe0   : > { %4022 = vmatmul.mubr.msk.f32.vlgmr.msra.gmra.mxu1 %vm684_vm0, %v1806_v47 }
 0xbe1   : > { %4044 = vmatpush3.msra.mxu1 %v3734_v14 }
 0xbe2   : > { %4045 = vmatprep.subr.mxu1 %v3733_v15 }
 0xbe3   : > { %4046 = vmatpush3.msra.mxu1 %v3733_v15 }
 0xbe4   : > { %4047 = vmatprep.subr.mxu1 %v3732_v2 }
 0xbe5   : > { %4048 = vmatpush3.msra.mxu1 %v3732_v2 }
 0xbe6   : > { %4049 = vmatprep.subr.mxu1 %v3731_v16 }
 0xbe7   : > { %4050 = vmatpush3.msra.mxu1 %v3731_v16 }
 0xca0   : > { %v4023_v53 = vpop.f32.mrf.mxu1 }
 0xca1   : > { %v1896_v54 = vadd.f32 %v4023_v53, %v3721_v52 }
 0xca2   : > { %v1890_v55 = vpop.f32.mrf.mxu1 }
 0xca3   : > { %v1891_v56 = vadd.f32 %v3721_v52, %v1890_v55  ;;  %v1900_v58 = vmax.f32 %v1896_v54, 0.0 }
 0xca5   : > { %v1899_v57 = vmax.f32 %v1891_v56, 0.0 }
 0xca7   : > { %4040 = vmatprep.mubr.msk.f32.mxu0 %vm1909_vm4, %v1899_v57 }
 0xca8   : > { %4041 = vmatmul.mubr.msk.f32.vlgmr.msra.gmra.mxu0 %vm1909_vm4, %v1900_v58 }
 0xd68   : > { %v4042_v59 = vpop.f32.mrf.mxu0 }
 0xd69   : > { %v1992_v61 = vadd.f32 %v4042_v59, %v4628_v7 }
 0xd6a   : > { %v1982_v62 = vpop.f32.mrf.mxu0 }
 0xd6b   : > { %v4694_v63 = vadd.f32 %v3726_v60, %v1992_v61  ;;  %v1991_v1 = vadd.f32 %v1982_v62, %v4631_v9 }
 0xd6d   : > { %v4697_v3 = vadd.f32 %v3726_v60, %v1991_v1  ;;  %v2009_v4 = vsel %vm684_vm0, %v4694_v63, 0.0 }
 0xd6e   : > { %2010 = vadd.xlane.f32.xlu1 %v2009_v4 }
 0xd6f   : > { %v2006_v5 = vsel %vm684_vm0, %v4697_v3, 0.0 }
 0xd70   : > { %2007 = vadd.xlane.f32.xlu0 %v2006_v5 }
 0xdf7   : > { %v2011_v44 = vpop.xlane.xlu1 %2010 }
 0xdf8   : > { %v2013_v43 = vmul.f32 0.03125, %v2011_v44 }
 0xdf9   : > { %v2008_v6 = vpop.xlane.xlu0 %2007 }
 0xdfa   : > { %v2015_v7 = vsub.f32 %v4694_v63, %v2013_v43  ;;  %v2012_v8 = vmul.f32 0.03125, %v2008_v6 }
 0xdfc   : > { %v2014_v10 = vsub.f32 %v4697_v3, %v2012_v8  ;;  %v2017_v11 = vmul.f32 %v2015_v7, %v2015_v7 }
 0xdfe   : > { %v2021_v9 = vsel %vm684_vm0, %v2017_v11, 0.0  ;;  %v2016_v12 = vmul.f32 %v2014_v10, %v2014_v10 }
 0xdff   : > { %2022 = vadd.xlane.f32.xlu1 %v2021_v9 }
 0xe00   : > { %v2018_v13 = vsel %vm684_vm0, %v2016_v12, 0.0 }
 0xe01   : > { %2019 = vadd.xlane.f32.xlu0 %v2018_v13 }
 0xe88   : > { %v2023_v17 = vpop.xlane.xlu1 %2022 }
 0xe89   : > { %v2025_v0 = vmul.f32 0.03125, %v2023_v17 }
 0xe8a   : > { %v2020_v18 = vpop.xlane.xlu0 %2019 }
 0xe8b   : > { %v2027_v19 = vadd.f32 1e-06, %v2025_v0  ;;  %v2024_v20 = vmul.f32 0.03125, %v2020_v18 }
 0xe8d   : > { %4233 = vrsqrt.f32 %v2027_v19  ;;  %v2026_v21 = vadd.f32 1e-06, %v2024_v20 }
 0xe8f   : > { %4235 = vrsqrt.f32 %v2026_v21 }
 0xe9a   : > { %v4234_v22 = vpop.eup %4233 }
 0xe9b   : > { %v2031_v24 = vmul.f32 %v4234_v22, %v2015_v7 }
 0xe9c   : > { %v4236_v25 = vpop.eup %4235 }
 0xe9d   : > { %v2030_v26 = vmul.f32 %v4236_v25, %v2014_v10  ;;  %v2039_v27 = vmul.f32 %v3729_v23, %v2031_v24 }
 0xe9f   : > { %v2038_v29 = vmul.f32 %v3729_v23, %v2030_v26  ;;  %v2047_v31 = vadd.f32 %v3730_v28, %v2039_v27 }
 0xea1   : > { %v2046_v30 = vadd.f32 %v3730_v28, %v2038_v29 }
 0xea3   : > { %4051 = vmatprep.mubr.msk.f32.mxu1 %vm684_vm0, %v2046_v30 }
 0xea4   : > { %4052 = vmatmul.mubr.msk.f32.vlgmr.msra.gmra.mxu1 %vm684_vm0, %v2047_v31 }
 0xf64   : > { %v4053_v33 = vpop.f32.mrf.mxu1 }
 0xf65   : > { %v4730_v38 = vadd.f32 %v4053_v33, %v3736_v32 }
 0xf66   : > { %v2133_v34 = vpop.f32.mrf.mxu1 }
 0xf67   : > { %v4732_v35 = vadd.f32 %v3736_v32, %v2133_v34  ;;  %2146 = vrot.lane.b32.xlu0 %v4730_v38, %s4295_s29 }
 0xf69   : > { %2144 = vrot.lane.b32.xlu1 %v4732_v35, %s4295_s29  ;;  %4058 = vmatprep.mubr.msk.f32.mxu1 %vm826_vm1, %v4732_v35  ;;  %s5045_s29 = smov 64  }
 0xf6b   : > { %2344 = vrot.lane.b32.xlu0 %v4732_v35, %s5043_s24 }
 0xf6d   : > { %2350 = vrot.lane.b32.xlu1 %v4730_v38, %s5044_s0 }
 0xf71   : > { %2348 = vrot.lane.b32.xlu1 %v4732_v35, %s5044_s0  ;;  %s5054_s0 = smov 16  }
 0xf75   : > { %2346 = vrot.lane.b32.xlu1 %v4730_v38, %s5043_s24  ;;  %s5053_s24 = smov 8  }
 0xfd9   : > { %v2147_v37 = vpop.permute.xlu0 %2146 }
 0xfda   : > { %4054 = vmatprep.subr.msk.mxu1 %vm826_vm1, %v2147_v37 }
 0xfdb   : > { %4055 = vmatpush3.xpose.msk.msra.mxu1 %vm826_vm1, %v2147_v37  ;;  %v2145_v39 = vpop.permute.xlu1 %2144 }
 0xfdc   : > { %4056 = vmatprep.subr.msk.mxu1 %vm826_vm1, %v2145_v39 }
 0xfdd   : > { %v2345_v41 = vpop.permute.xlu0 %2344 }
 0xfdf   : > { %4057 = vmatpush3.xpose.msk.msra.mxu1 %vm826_vm1, %v2145_v39  ;;  %v2351_v40 = vpop.permute.xlu1 %2350 }
 0xfe0   : > { %4068 = vmatprep.subr.msk.mxu1 %vm826_vm1, %v2351_v40 }
 0xfe2   : > { %4059 = vmatmul.mubr.msk.f32.vlgmr.msra.gmra.mxu1 %vm826_vm1, %v4730_v38 }
 0xfe3   : > { %v2349_v42 = vpop.permute.xlu1 %2348  ;;  %4069 = vmatpush3.xpose.msk.msra.mxu1 %vm826_vm1, %v2351_v40  ;;  %4072 = vmatprep.mubr.msk.f32.mxu1 %vm826_vm1, %v2345_v41 }
 0xfe4   : > { %4070 = vmatprep.subr.msk.mxu1 %vm826_vm1, %v2349_v42 }
 0xfe7   : > { %4071 = vmatpush3.xpose.msk.msra.mxu1 %vm826_vm1, %v2349_v42  ;;  %v2347_v46 = vpop.permute.xlu1 %2346 }
 0xfea   : > { %4073 = vmatmul.mubr.msk.f32.vlgmr.msra.gmra.mxu1 %vm826_vm1, %v2347_v46 }
0x10a2   : > { %v4060_v47 = vpop.f32.mrf.mxu1 }
0x10a3   : > { %v2232_v49 = vmul.f32 0.35355338, %v4060_v47 }
0x10a4   : > { %v2222_v36 = vpop.f32.mrf.mxu1 }
0x10a5   : > { %v2231_v50 = vmul.f32 0.35355338, %v2222_v36  ;;  %v2234_v51 = vadd.f32 %v2232_v49, %v4505_v45 }
0x10a7   : > { %v2238_v52 = vsel %vm914_vm2, %v2234_v51, -inf  ;;  %v2233_v53 = vadd.f32 %v2231_v50, %v4508_v48 }
0x10a8   : > { %2239 = vmax.xlane.f32.xlu1 %v2238_v52 }
0x10a9   : > { %v2235_v54 = vsel %vm914_vm2, %v2233_v53, -inf }
0x10aa   : > { %v4074_v55 = vpop.f32.mrf.mxu1  ;;  %2236 = vmax.xlane.f32.xlu0 %v2235_v54  ;;  %v4286_v54 = vld [vmem:[%s4502_s3] sm:$0xff] }
0x10ab   : > { %v2436_v57 = vmul.f32 0.35355338, %v4074_v55 }
0x10ac   : > { %v2426_v56 = vpop.f32.mrf.mxu1 }
0x10ad   : > { %v2435_v58 = vmul.f32 0.35355338, %v2426_v56  ;;  %v2438_v61 = vadd.f32 %v2436_v57, %v4505_v45 }
0x10af   : > { %v2437_v59 = vadd.f32 %v2435_v58, %v4508_v48  ;;  %v2442_v62 = vsel %vm914_vm2, %v2438_v61, -inf }
0x10b1   : > { %v2439_v60 = vsel %vm914_vm2, %v2437_v59, -inf }
0x10b2   : > { %2440 = vmax.xlane.f32.xlu0 %v2439_v60 }
0x10b6   : > { %2443 = vmax.xlane.f32.xlu0 %v2442_v62 }
0x10b9   : > { %2257 = vrot.lane.b32.xlu1 %v4732_v35, %s5045_s29 }
0x10bd   : > { %2463 = vrot.lane.b32.xlu1 %v4730_v38, %s5046_s26 }
0x10c1   : > { %2461 = vrot.lane.b32.xlu1 %v4732_v35, %s5046_s26 }
0x10cc   : > { %2259 = vrot.lane.b32.xlu0 %v4730_v38, %s5045_s29  ;;  %s5056_s29 = sld [smem:[#allocation4_spill]] }
0x1131   : > { %v2240_v48 = vpop.xlane.xlu1 %2239 }
0x1132   : > { %v2242_v1 = vsub.f32 %v2234_v51, %v2240_v48  ;;  %v4285_v51 = vld [vmem:[%s4502_s3 + $0x8] sm:$0xff]  ;;  %s5052_s3 = smov 40  }
0x1133   : > { %v2237_v4 = vpop.xlane.xlu0 %2236 }
0x1134   : > { %v2245_v45 = vmul.f32 1.442695, %v2242_v1  ;;  %v2241_v5 = vsub.f32 %v2233_v53, %v2237_v4 }
0x1135   : > { %v2258_v11 = vpop.permute.xlu1 %2257 }
0x1136   : > { %4237 = vpow2.f32 %v2245_v45  ;;  %v2243_v44 = vmul.f32 1.442695, %v2241_v5 }
0x1138   : > { %4239 = vpow2.f32 %v2243_v44 }
0x1139   : > { %v2464_v16 = vpop.permute.xlu1 %2463 }
0x113b   : > { %v2441_v43 = vpop.xlane.xlu0 %2440 }
0x113c   : > { %v2445_v6 = vsub.f32 %v2437_v59, %v2441_v43 }
0x113d   : > { %v2462_v20 = vpop.permute.xlu1 %2461 }
0x113e   : > { %v2447_v7 = vmul.f32 1.442695, %v2445_v6 }
0x113f   : > { %v2444_v8 = vpop.xlane.xlu0 %2443 }
0x1140   : > { %4241 = vpow2.f32 %v2447_v7  ;;  %v2446_v10 = vsub.f32 %v2438_v61, %v2444_v8 }
0x1142   : > { %v2449_v9 = vmul.f32 1.442695, %v2446_v10 }
0x1143   : > { %v4238_v12 = vpop.eup %4237  ;;  %v2260_v13 = vpop.permute.xlu0 %2259 }
0x1144   : > { %4243 = vpow2.f32 %v2449_v9  ;;  %4061 = vmatprep.subr.mxu0 %v2260_v13  ;;  %v2250_v14 = vsel %vm914_vm2, %v4238_v12, 0.0 }
0x1145   : > { %v4240_v15 = vpop.eup %4239  ;;  %2251 = vadd.xlane.f32.xlu1 %v2250_v14  ;;  %4062 = vmatpush3.msra.mxu0 %v2260_v13 }
0x1146   : > { %4063 = vmatprep.subr.mxu0 %v2258_v11  ;;  %v2247_v2 = vsel %vm914_vm2, %v4240_v15, 0.0 }
0x1147   : > { %2248 = vadd.xlane.f32.xlu0 %v2247_v2  ;;  %4064 = vmatpush3.msra.mxu0 %v2258_v11 }
0x1148   : > { %4075 = vmatprep.subr.mxu0 %v2464_v16 }
0x114d   : > { %v4242_v17 = vpop.eup %4241 }
0x114e   : > { %v2451_v0 = vsel %vm914_vm2, %v4242_v17, 0.0 }
0x114f   : > { %2452 = vadd.xlane.f32.xlu0 %v2451_v0 }
0x1151   : > { %v4244_v18 = vpop.eup %4243 }
0x1152   : > { %v2454_v19 = vsel %vm914_vm2, %v4244_v18, 0.0 }
0x1153   : > { %2455 = vadd.xlane.f32.xlu1 %v2454_v19 }
0x1164   : > { %2552 = vrot.lane.b32.xlu1 %v4732_v35, %s5047_s28 }
0x1165   : > { %2554 = vrot.lane.b32.xlu0 %v4730_v38, %s5047_s28 }
0x1168   : > { %2550 = vrot.lane.b32.xlu1 %v4730_v38, %s5048_s4 }
0x1169   : > { %2548 = vrot.lane.b32.xlu0 %v4732_v35, %s5048_s4 }
0x11ce   : > { %v2252_v21 = vpop.xlane.xlu1 %2251 }
0x11cf   : > { %4245 = vrcp.f32 %v2252_v21 }
0x11d0   : > { %v2249_v22 = vpop.xlane.xlu0 %2248 }
0x11d1   : > { %4247 = vrcp.f32 %v2249_v22 }
0x11d8   : > { %v2453_v23 = vpop.xlane.xlu0 %2452 }
0x11d9   : > { %4249 = vrcp.f32 %v2453_v23 }
0x11dc   : > { %v2456_v24 = vpop.xlane.xlu1 %2455  ;;  %v4246_v25 = vpop.eup %4245 }
0x11dd   : > { %4251 = vrcp.f32 %v2456_v24  ;;  %v2256_v28 = vmul.f32 %v4246_v25, %v4238_v12  ;;  %v2555_v29 = vpop.permute.xlu0 %2554 }
0x11de   : > { %v4248_v26 = vpop.eup %4247 }
0x11df   : > { %v2254_v27 = vmul.f32 %v4248_v26, %v4240_v15 }
0x11e0   : > { %v2553_v37 = vpop.permute.xlu1 %2552 }
0x11e1   : > { %4065 = vmatprep.mubr.msk.f32.mxu0 %vm914_vm2, %v2254_v27  ;;  %v2549_v34 = vpop.permute.xlu0 %2548 }
0x11e2   : > { %4066 = vmatmul.mubr.msk.f32.vlgmr.msra.gmra.mxu0 %vm914_vm2, %v2256_v28 }
0x11e3   : > { %4076 = vmatpush3.msra.mxu0 %v2464_v16 }
0x11e4   : > { %4077 = vmatprep.subr.mxu0 %v2462_v20  ;;  %v2551_v39 = vpop.permute.xlu1 %2550 }
0x11e5   : > { %4078 = vmatpush3.msra.mxu0 %v2462_v20 }
0x11e6   : > { %v4250_v30 = vpop.eup %4249  ;;  %4082 = vmatprep.subr.msk.mxu0 %vm826_vm1, %v2555_v29 }
0x11e7   : > { %v2458_v31 = vmul.f32 %v4250_v30, %v4242_v17 }
0x11e9   : > { %4079 = vmatprep.mubr.msk.f32.mxu0 %vm914_vm2, %v2458_v31 }
0x11ea   : > { %v4252_v32 = vpop.eup %4251 }
0x11eb   : > { %v2460_v33 = vmul.f32 %v4252_v32, %v4244_v18 }
0x11ed   : > { %4080 = vmatmul.mubr.msk.f32.vlgmr.msra.gmra.mxu0 %vm914_vm2, %v2460_v33 }
0x11ee   : > { %4083 = vmatpush3.xpose.msk.msra.mxu0 %vm826_vm1, %v2555_v29  ;;  %4086 = vmatprep.mubr.msk.f32.mxu0 %vm826_vm1, %v2549_v34 }
0x11ef   : > { %4084 = vmatprep.subr.msk.mxu0 %vm826_vm1, %v2553_v37 }
0x11f2   : > { %4085 = vmatpush3.xpose.msk.msra.mxu0 %vm826_vm1, %v2553_v37 }
0x11f5   : > { %4087 = vmatmul.mubr.msk.f32.vlgmr.msra.gmra.mxu0 %vm826_vm1, %v2551_v39 }
0x12a2   : > { %v4798_v40 = vpop.f32.mrf.mxu0 }
0x12a4   : > { %v4800_v41 = vpop.f32.mrf.mxu0 }
0x12ad   : > { %v4802_v42 = vpop.f32.mrf.mxu0 }
0x12af   : > { %v4804_v46 = vpop.f32.mrf.mxu0 }
0x12b5   : > { %v4088_v47 = vpop.f32.mrf.mxu0 }
0x12b6   : > { %v2640_v49 = vmul.f32 0.35355338, %v4088_v47 }
0x12b7   : > { %v2630_v36 = vpop.f32.mrf.mxu0 }
0x12b8   : > { %v2639_v50 = vmul.f32 0.35355338, %v2630_v36  ;;  %v2642_v52 = vadd.f32 %v4285_v51, %v2640_v49  ;;  %v3765_v49 = vld [vmem:[%s4992_s7 + $0x30] sm:$0xff]  ;;  %v3764_v36 = vld [vmem:[%s4992_s7 + $0x28] sm:$0xff] }
0x12ba   : > { %v2646_v53 = vsel %vm914_vm2, %v2642_v52, -inf  ;;  %v2641_v55 = vadd.f32 %v4286_v54, %v2639_v50  ;;  %v3763_v50 = vld [vmem:[%s4992_s7 + $0x20] sm:$0xff] }
0x12bb   : > { %2647 = vmax.xlane.f32.xlu1 %v2646_v53 }
0x12bc   : > { %v2643_v56 = vsel %vm914_vm2, %v2641_v55, -inf }
0x12bd   : > { %2644 = vmax.xlane.f32.xlu0 %v2643_v56 }
0x12cc   : > { %2665 = vrot.lane.b32.xlu1 %v4732_v35, %s5049_s21 }
0x12d0   : > { %2758 = vrot.lane.b32.xlu1 %v4730_v38, %s5050_s2 }
0x12d4   : > { %2756 = vrot.lane.b32.xlu1 %v4732_v35, %s5050_s2  ;;  %s3683_s2 = sshll.u32 %s5058_s22, 1 }
0x12d5   : > { %s668_s26 = scalar_lea.vmem %s5056_s29, %s3683_s2  ;;  %s672_s28 = scalar_lea.vmem %s5004_s19, %s3683_s2 }
0x12d8   : > { %2754 = vrot.lane.b32.xlu1 %v4730_v38, %s5051_s30 }
0x1344   : > { %v2648_v57 = vpop.xlane.xlu1 %2647 }
0x1345   : > { %v2650_v58 = vsub.f32 %v2642_v52, %v2648_v57 }
0x1346   : > { %v2645_v59 = vpop.xlane.xlu0 %2644 }
0x1347   : > { %v2653_v60 = vmul.f32 1.442695, %v2650_v58  ;;  %v2649_v61 = vsub.f32 %v2641_v55, %v2645_v59 }
0x1348   : > { %v2666_v43 = vpop.permute.xlu1 %2665 }
0x1349   : > { %4253 = vpow2.f32 %v2653_v60  ;;  %v2651_v62 = vmul.f32 1.442695, %v2649_v61 }
0x134b   : > { %4255 = vpow2.f32 %v2651_v62 }
0x134c   : > { %v2759_v7 = vpop.permute.xlu1 %2758 }
0x1350   : > { %v2757_v13 = vpop.permute.xlu1 %2756 }
0x1354   : > { %v2755_v14 = vpop.permute.xlu1 %2754 }
0x1356   : > { %v4254_v48 = vpop.eup %4253 }
0x1357   : > { %v2658_v1 = vsel %vm914_vm2, %v4254_v48, 0.0 }
0x1358   : > { %v4256_v4 = vpop.eup %4255  ;;  %2659 = vadd.xlane.f32.xlu0 %v2658_v1 }
0x1359   : > { %v2655_v45 = vsel %vm914_vm2, %v4256_v4, 0.0 }
0x135c   : > { %2656 = vadd.xlane.f32.xlu0 %v2655_v45 }
0x1372   : > { %2667 = vrot.lane.b32.xlu0 %v4730_v38, %s5049_s21 }
0x1376   : > { %2752 = vrot.lane.b32.xlu0 %v4732_v35, %s5051_s30  ;;  %s677_s30 = scalar_lea.vmem %s5005_s20, %s4427_s23 }
0x13e1   : > { %v2660_v5 = vpop.xlane.xlu0 %2659 }
0x13e2   : > { %4257 = vrcp.f32 %v2660_v5 }
0x13e5   : > { %v2657_v44 = vpop.xlane.xlu0 %2656 }
0x13e6   : > { %4259 = vrcp.f32 %v2657_v44 }
0x13e9   : > { %v2668_v6 = vpop.permute.xlu0 %2667 }
0x13ea   : > { %4089 = vmatprep.subr.mxu1 %v2668_v6 }
0x13eb   : > { %4090 = vmatpush3.msra.mxu1 %v2668_v6 }
0x13ec   : > { %4091 = vmatprep.subr.mxu1 %v2666_v43 }
0x13ed   : > { %4092 = vmatpush3.msra.mxu1 %v2666_v43  ;;  %v2753_v12 = vpop.permute.xlu0 %2752 }
0x13ee   : > { %4096 = vmatprep.subr.msk.mxu1 %vm826_vm1, %v2759_v7 }
0x13ef   : > { %v4258_v8 = vpop.eup %4257 }
0x13f0   : > { %v2664_v9 = vmul.f32 %v4258_v8, %v4254_v48 }
0x13f3   : > { %v4260_v10 = vpop.eup %4259 }
0x13f4   : > { %v2662_v11 = vmul.f32 %v4260_v10, %v4256_v4 }
0x13f6   : > { %4093 = vmatprep.mubr.msk.f32.mxu1 %vm914_vm2, %v2662_v11 }
0x13f7   : > { %4094 = vmatmul.mubr.msk.f32.vlgmr.msra.gmra.mxu1 %vm914_vm2, %v2664_v9 }
0x13f8   : > { %4097 = vmatpush3.xpose.msk.msra.mxu1 %vm826_vm1, %v2759_v7  ;;  %4100 = vmatprep.mubr.msk.f32.mxu1 %vm826_vm1, %v2753_v12 }
0x13f9   : > { %4098 = vmatprep.subr.msk.mxu1 %vm826_vm1, %v2757_v13 }
0x13fc   : > { %4099 = vmatpush3.xpose.msk.msra.mxu1 %vm826_vm1, %v2757_v13 }
0x13ff   : > { %4101 = vmatmul.mubr.msk.f32.vlgmr.msra.gmra.mxu1 %vm826_vm1, %v2755_v14 }
0x14b7   : > { %v4095_v15 = vpop.f32.mrf.mxu1 }
0x14b9   : > { %v2743_v2 = vpop.f32.mrf.mxu1 }
0x14bf   : > { %v4102_v16 = vpop.f32.mrf.mxu1 }
0x14c0   : > { %v2844_v17 = vmul.f32 0.35355338, %v4102_v16  ;;  %v3777_v16 = vld [vmem:[%s4996_s11 + $0x30] sm:$0xff] }
0x14c1   : > { %v2834_v0 = vpop.f32.mrf.mxu1 }
0x14c2   : > { %v2843_v18 = vmul.f32 0.35355338, %v2834_v0  ;;  %v2846_v19 = vadd.f32 %v4285_v51, %v2844_v17  ;;  %v3776_v17 = vld [vmem:[%s4996_s11 + $0x28] sm:$0xff]  ;;  %v3775_v0 = vld [vmem:[%s4996_s11 + $0x20] sm:$0xff] }
0x14c4   : > { %v2850_v20 = vsel %vm914_vm2, %v2846_v19, -inf  ;;  %v2845_v21 = vadd.f32 %v4286_v54, %v2843_v18  ;;  %v3790_v18 = vld [vmem:[%s4998_s13 + $0x78] sm:$0xff] }
0x14c5   : > { %2851 = vmax.xlane.f32.xlu1 %v2850_v20  ;;  %v3788_v20 = vld [vmem:[%s4998_s13 + $0x68] sm:$0xff] }
0x14c6   : > { %v2847_v22 = vsel %vm914_vm2, %v2845_v21, -inf }
0x14c7   : > { %2848 = vmax.xlane.f32.xlu0 %v2847_v22 }
0x14d6   : > { %2869 = vrot.lane.b32.xlu1 %v4732_v35, %s5052_s3 }
0x14da   : > { %2958 = vrot.lane.b32.xlu1 %v4804_v46, %s5053_s24 }
0x14de   : > { %2960 = vrot.lane.b32.xlu1 %v4802_v42, %s5053_s24  ;;  %s5055_s24 = smov 24  }
0x14e2   : > { %2968 = vrot.lane.b32.xlu1 %v4095_v15, %s5054_s0 }
0x154e   : > { %v2852_v23 = vpop.xlane.xlu1 %2851 }
0x154f   : > { %v2854_v24 = vsub.f32 %v2846_v19, %v2852_v23  ;;  %v3789_v19 = vld [vmem:[%s4998_s13 + $0x70] sm:$0xff] }
0x1550   : > { %v2849_v25 = vpop.xlane.xlu0 %2848 }
0x1551   : > { %v2857_v26 = vmul.f32 1.442695, %v2854_v24  ;;  %v2853_v27 = vsub.f32 %v2845_v21, %v2849_v25  ;;  %v3787_v21 = vld [vmem:[%s4998_s13 + $0x60] sm:$0xff] }
0x1552   : > { %v2870_v37 = vpop.permute.xlu1 %2869 }
0x1553   : > { %4261 = vpow2.f32 %v2857_v26  ;;  %v2855_v28 = vmul.f32 1.442695, %v2853_v27 }
0x1555   : > { %4263 = vpow2.f32 %v2855_v28 }
0x1556   : > { %v2959_v53 = vpop.permute.xlu1 %2958 }
0x1557   : > { %v2980_v57 = vsel %vm826_vm1, %v4800_v41, %v2959_v53  ;;  %v3770_v41 = vld [vmem:[%s4993_s8 + $0x1] ss:$0 sm:$0xff] }
0x155a   : > { %v2961_v54 = vpop.permute.xlu1 %2960 }
0x155b   : > { %v2981_v59 = vsel %vm826_vm1, %v4798_v40, %v2961_v54 }
0x155e   : > { %v2969_v55 = vpop.permute.xlu1 %2968 }
0x155f   : > { %v2983_v62 = vsel %vm914_vm2, %v2981_v59, %v2969_v55 }
0x1560   : > { %v4262_v29 = vpop.eup %4261 }
0x1561   : > { %v2862_v30 = vsel %vm914_vm2, %v4262_v29, 0.0 }
0x1562   : > { %v4264_v35 = vpop.eup %4263  ;;  %2863 = vadd.xlane.f32.xlu0 %v2862_v30 }
0x1563   : > { %v2859_v31 = vsel %vm914_vm2, %v4264_v35, 0.0 }
0x1566   : > { %2860 = vadd.xlane.f32.xlu0 %v2859_v31 }
0x157c   : > { %2871 = vrot.lane.b32.xlu0 %v4730_v38, %s5052_s3  ;;  %v3766_v38 = vld [vmem:[%s4992_s7 + $0x38] sm:$0xff] }
0x1580   : > { %2966 = vrot.lane.b32.xlu0 %v2743_v2, %s5054_s0  ;;  %v3778_v2 = vld [vmem:[%s4996_s11 + $0x38] sm:$0xff] }
0x1581   : > { %4121 = vmatprep.subr.mxu1 %v3778_v2 }
0x1582   : > { %4122 = vmatpush3.msra.mxu1 %v3778_v2 }
0x1583   : > { %4123 = vmatprep.subr.mxu1 %v3777_v16 }
0x1584   : > { %4124 = vmatpush3.msra.mxu1 %v3777_v16  ;;  %v3796_v16 = vld [vmem:[%s5001_s16] ss:$0 sm:$0xff] }
0x1585   : > { %4125 = vmatprep.subr.mxu1 %v3776_v17 }
0x1586   : > { %4126 = vmatpush3.msra.mxu1 %v3776_v17 }
0x1587   : > { %4127 = vmatprep.subr.mxu1 %v3775_v0 }
0x1588   : > { %4128 = vmatpush3.msra.mxu1 %v3775_v0 }
0x15eb   : > { %v2864_v32 = vpop.xlane.xlu0 %2863 }
0x15ec   : > { %4265 = vrcp.f32 %v2864_v32 }
0x15ef   : > { %v2861_v33 = vpop.xlane.xlu0 %2860 }
0x15f0   : > { %4267 = vrcp.f32 %v2861_v33 }
0x15f3   : > { %v2872_v34 = vpop.permute.xlu0 %2871 }
0x15f4   : > { %4103 = vmatprep.subr.mxu0 %v2872_v34 }
0x15f5   : > { %4104 = vmatpush3.msra.mxu0 %v2872_v34 }
0x15f6   : > { %4105 = vmatprep.subr.mxu0 %v2870_v37 }
0x15f7   : > { %4106 = vmatpush3.msra.mxu0 %v2870_v37  ;;  %v2967_v56 = vpop.permute.xlu0 %2966 }
0x15f8   : > { %4110 = vmatprep.subr.mxu0 %v3766_v38  ;;  %v2982_v60 = vsel %vm914_vm2, %v2980_v57, %v2967_v56  ;;  %v3794_v56 = vld [vmem:[%s4999_s14 + $0x1] ss:$0 sm:$0xff] }
0x15f9   : > { %v4266_v39 = vpop.eup %4265 }
0x15fa   : > { %v2868_v47 = vmul.f32 %v4266_v39, %v4262_v29  ;;  %v3773_v29 = vld [vmem:[%s4994_s9 + $0x1] ss:$0 sm:$0xff] }
0x15fd   : > { %v4268_v42 = vpop.eup %4267 }
0x15fe   : > { %v2866_v46 = vmul.f32 %v4268_v42, %v4264_v35  ;;  %v3774_v35 = vld [vmem:[%s4995_s10 + $0x1] ss:$0 sm:$0xff]  ;;  %v3786_v42 = vld [vmem:[%s4998_s13 + $0x58] sm:$0xff] }
0x1600   : > { %4107 = vmatprep.mubr.msk.f32.mxu0 %vm914_vm2, %v2866_v46  ;;  %v3785_v46 = vld [vmem:[%s4998_s13 + $0x50] sm:$0xff] }
0x1601   : > { %4108 = vmatmul.mubr.msk.f32.vlgmr.msra.gmra.mxu0 %vm914_vm2, %v2868_v47  ;;  %v3784_v47 = vld [vmem:[%s4998_s13 + $0x48] sm:$0xff] }
0x1602   : > { %4111 = vmatpush3.msra.mxu0 %v3766_v38  ;;  %v3783_v38 = vld [vmem:[%s4998_s13 + $0x40] sm:$0xff] }
0x1603   : > { %4112 = vmatprep.subr.mxu0 %v3765_v49 }
0x1604   : > { %4113 = vmatpush3.msra.mxu0 %v3765_v49  ;;  %v3780_v49 = vld [vmem:[%s4997_s12 + $0x1] ss:$0 sm:$0xff] }
0x1605   : > { %4114 = vmatprep.subr.mxu0 %v3764_v36 }
0x1606   : > { %4115 = vmatpush3.msra.mxu0 %v3764_v36 }
0x1607   : > { %4116 = vmatprep.subr.mxu0 %v3763_v50 }
0x1608   : > { %4117 = vmatpush3.msra.mxu0 %v3763_v50 }
0x1609   : > { %4132 = vmatprep.subr.mxu0 %v3790_v18 }
0x16c1   : > { %v4109_v51 = vpop.f32.mrf.mxu0 }
0x16c2   : > { %2976 = vrot.lane.b32.xlu1 %v4109_v51, %s5055_s24 }
0x16c3   : > { %v2947_v52 = vpop.f32.mrf.mxu0 }
0x16c4   : > { %2974 = vrot.lane.b32.xlu0 %v2947_v52, %s5055_s24 }
0x1734   : > { %v2977_v58 = vpop.permute.xlu1 %2976 }
0x1735   : > { %v2985_v1 = vsel %vm1664_vm3, %v2983_v62, %v2977_v58 }
0x1736   : > { %v2975_v61 = vpop.permute.xlu0 %2974 }
0x1737   : > { %v2984_v48 = vsel %vm1664_vm3, %v2982_v60, %v2975_v61 }
0x1738   : > { %4118 = vmatprep.mubr.msk.f32.mxu0 %vm684_vm0, %v2984_v48 }
0x1739   : > { %4119 = vmatmul.mubr.msk.f32.vlgmr.msra.gmra.mxu0 %vm684_vm0, %v2985_v1 }
0x173a   : > { %4133 = vmatpush3.msra.mxu0 %v3790_v18 }
0x173b   : > { %4134 = vmatprep.subr.mxu0 %v3789_v19 }
0x173c   : > { %4135 = vmatpush3.msra.mxu0 %v3789_v19 }
0x173d   : > { %4136 = vmatprep.subr.mxu0 %v3788_v20 }
0x173e   : > { %4137 = vmatpush3.msra.mxu0 %v3788_v20 }
0x173f   : > { %4138 = vmatprep.subr.mxu0 %v3787_v21 }
0x1740   : > { %4139 = vmatpush3.msra.mxu0 %v3787_v21  ;;  %v3372_v21 = vld [vmem:[%s668_s26] sm:$0x3] }
0x1741   : > { %4140 = vmatprep.subr.mxu0 %v3786_v42 }
0x1742   : > { %4141 = vmatpush3.msra.mxu0 %v3786_v42 }
0x1743   : > { %4142 = vmatprep.subr.mxu0 %v3785_v46 }
0x1744   : > { %4143 = vmatpush3.msra.mxu0 %v3785_v46 }
0x1745   : > { %4144 = vmatprep.subr.mxu0 %v3784_v47 }
0x1746   : > { %4145 = vmatpush3.msra.mxu0 %v3784_v47 }
0x1747   : > { %4146 = vmatprep.subr.mxu0 %v3783_v38 }
0x1748   : > { %4147 = vmatpush3.msra.mxu0 %v3783_v38 }
0x17f9   : > { %v4120_v4 = vpop.f32.mrf.mxu0 }
0x17fa   : > { %v3073_v40 = vadd.f32 %v4120_v4, %v4694_v63 }
0x17fb   : > { %v3063_v45 = vpop.f32.mrf.mxu0 }
0x17fc   : > { %v4876_v5 = vadd.f32 %v3770_v41, %v3073_v40  ;;  %v3072_v44 = vadd.f32 %v3063_v45, %v4697_v3 }
0x17fe   : > { %v4879_v43 = vadd.f32 %v3770_v41, %v3072_v44  ;;  %v3091_v6 = vsel %vm684_vm0, %v4876_v5, 0.0 }
0x17ff   : > { %3092 = vadd.xlane.f32.xlu1 %v3091_v6 }
0x1800   : > { %v3088_v7 = vsel %vm684_vm0, %v4879_v43, 0.0 }
0x1801   : > { %3089 = vadd.xlane.f32.xlu0 %v3088_v7 }
0x1888   : > { %v3093_v8 = vpop.xlane.xlu1 %3092 }
0x1889   : > { %v3095_v10 = vmul.f32 0.03125, %v3093_v8  ;;  %v4309_v8 = vmov 0.0  }
0x188a   : > { %v3090_v11 = vpop.xlane.xlu0 %3089  ;;  %4151 = vmatprep.subr.mxu1 %v4309_v8 }
0x188b   : > { %v3094_v9 = vmul.f32 0.03125, %v3090_v11  ;;  %v3097_v63 = vsub.f32 %v4876_v5, %v3095_v10 }
0x188d   : > { %v3096_v12 = vsub.f32 %v4879_v43, %v3094_v9  ;;  %v3099_v14 = vmul.f32 %v3097_v63, %v3097_v63 }
0x188f   : > { %v3098_v13 = vmul.f32 %v3096_v12, %v3096_v12  ;;  %v3103_v15 = vsel %vm684_vm0, %v3099_v14, 0.0  ;;  %v3795_v14 = vld [vmem:[%s5000_s15] ss:$0 sm:$0xff] }
0x1891   : > { %v3100_v3 = vsel %vm684_vm0, %v3098_v13, 0.0 }
0x1892   : > { %3101 = vadd.xlane.f32.xlu0 %v3100_v3 }
0x1896   : > { %3104 = vadd.xlane.f32.xlu0 %v3103_v15 }
0x191b   : > { %v3102_v22 = vpop.xlane.xlu0 %3101 }
0x191c   : > { %v3106_v23 = vmul.f32 0.03125, %v3102_v22  ;;  %v3451_v22 = vld [vmem:[%s5002_s17 + $0x18] sm:$0xff] }
0x191e   : > { %v3108_v24 = vadd.f32 1e-06, %v3106_v23  ;;  %v3450_v23 = vld [vmem:[%s5002_s17 + $0x10] sm:$0xff] }
0x191f   : > { %v3105_v25 = vpop.xlane.xlu0 %3104 }
0x1920   : > { %4269 = vrsqrt.f32 %v3108_v24  ;;  %v3107_v26 = vmul.f32 0.03125, %v3105_v25  ;;  %v3449_v24 = vld [vmem:[%s5002_s17 + $0x8] sm:$0xff]  ;;  %v3448_v25 = vld [vmem:[%s5002_s17] sm:$0xff] }
0x1922   : > { %v3109_v27 = vadd.f32 1e-06, %v3107_v26 }
0x1924   : > { %4271 = vrsqrt.f32 %v3109_v27 }
0x192d   : > { %v4270_v28 = vpop.eup %4269 }
0x192e   : > { %v3112_v30 = vmul.f32 %v4270_v28, %v3096_v12  ;;  %v3798_v28 = vld [vmem:[%s5003_s18] ss:$0 sm:$0xff] }
0x1930   : > { %v3120_v31 = vmul.f32 %v3773_v29, %v3112_v30 }
0x1931   : > { %v4272_v32 = vpop.eup %4271 }
0x1932   : > { %v3113_v33 = vmul.f32 %v4272_v32, %v3097_v63  ;;  %v3128_v34 = vadd.f32 %v3774_v35, %v3120_v31 }
0x1934   : > { %v3121_v37 = vmul.f32 %v3773_v29, %v3113_v33  ;;  %4129 = vmatprep.mubr.msk.f32.mxu1 %vm684_vm0, %v3128_v34 }
0x1936   : > { %v3129_v39 = vadd.f32 %v3774_v35, %v3121_v37 }
0x1938   : > { %4130 = vmatmul.mubr.msk.f32.vlgmr.msra.gmra.mxu1 %vm684_vm0, %v3129_v39 }
0x1939   : > { %4155 = vmatprep.mubr.msk.f32.mxu1 %vm4310_vm5, %v4309_v8 }
0x19f8   : > { %v4131_v36 = vpop.f32.mrf.mxu1 }
0x19f9   : > { %v3221_v50 = vadd.f32 %v4131_v36, %v3780_v49 }
0x19fa   : > { %v3215_v51 = vpop.f32.mrf.mxu1 }
0x19fb   : > { %v3216_v52 = vadd.f32 %v3780_v49, %v3215_v51  ;;  %v3225_v54 = vmax.f32 %v3221_v50, 0.0 }
0x19fd   : > { %v3224_v53 = vmax.f32 %v3216_v52, 0.0 }
0x19ff   : > { %4148 = vmatprep.mubr.msk.f32.mxu0 %vm1909_vm4, %v3224_v53 }
0x1a00   : > { %4149 = vmatmul.mubr.msk.f32.vlgmr.msra.gmra.mxu0 %vm1909_vm4, %v3225_v54 }
0x1ac0   : > { %v4150_v55 = vpop.f32.mrf.mxu0 }
0x1ac1   : > { %v3317_v57 = vadd.f32 %v4150_v55, %v4876_v5 }
0x1ac2   : > { %v3307_v58 = vpop.f32.mrf.mxu0 }
0x1ac3   : > { %v3327_v59 = vadd.f32 %v3794_v56, %v3317_v57  ;;  %v3316_v60 = vadd.f32 %v3307_v58, %v4879_v43 }
0x1ac5   : > { %v3326_v61 = vadd.f32 %v3794_v56, %v3316_v60  ;;  %v3333_v62 = vsel %vm684_vm0, %v3327_v59, 0.0 }
0x1ac6   : > { %3334 = vadd.xlane.f32.xlu0 %v3333_v62 }
0x1ac7   : > { %v3330_v48 = vsel %vm684_vm0, %v3326_v61, 0.0 }
0x1ac8   : > { %3331 = vadd.xlane.f32.xlu1 %v3330_v48 }
0x1b4f   : > { %v3335_v1 = vpop.xlane.xlu0 %3334 }
0x1b50   : > { %v3337_v4 = vmul.f32 0.03125, %v3335_v1 }
0x1b51   : > { %v3332_v41 = vpop.xlane.xlu1 %3331 }
0x1b52   : > { %v3339_v40 = vsub.f32 %v3327_v59, %v3337_v4  ;;  %v3336_v45 = vmul.f32 0.03125, %v3332_v41 }
0x1b54   : > { %v3338_v44 = vsub.f32 %v3326_v61, %v3336_v45  ;;  %v3341_v6 = vmul.f32 %v3339_v40, %v3339_v40 }
0x1b56   : > { %v3345_v5 = vsel %vm684_vm0, %v3341_v6, 0.0  ;;  %v3340_v7 = vmul.f32 %v3338_v44, %v3338_v44 }
0x1b57   : > { %3346 = vadd.xlane.f32.xlu0 %v3345_v5 }
0x1b58   : > { %v3342_v43 = vsel %vm684_vm0, %v3340_v7, 0.0 }
0x1b59   : > { %3343 = vadd.xlane.f32.xlu1 %v3342_v43 }
0x1be0   : > { %v3347_v10 = vpop.xlane.xlu0 %3346 }
0x1be1   : > { %v3349_v11 = vmul.f32 0.03125, %v3347_v10 }
0x1be2   : > { %v3344_v9 = vpop.xlane.xlu1 %3343 }
0x1be3   : > { %v3351_v63 = vadd.f32 1e-06, %v3349_v11  ;;  %v3348_v12 = vmul.f32 0.03125, %v3344_v9 }
0x1be5   : > { %4273 = vrsqrt.f32 %v3351_v63  ;;  %v3350_v13 = vadd.f32 1e-06, %v3348_v12 }
0x1be7   : > { %4275 = vrsqrt.f32 %v3350_v13 }
0x1bf2   : > { %v4274_v3 = vpop.eup %4273 }
0x1bf3   : > { %v3355_v15 = vmul.f32 %v4274_v3, %v3339_v40 }
0x1bf4   : > { %v4276_v2 = vpop.eup %4275 }
0x1bf5   : > { %v3363_v17 = vmul.f32 %v3795_v14, %v3355_v15  ;;  %v3354_v0 = vmul.f32 %v4276_v2, %v3338_v44 }
0x1bf7   : > { %v3371_v18 = vadd.f32 %v3796_v16, %v3363_v17  ;;  %v3362_v19 = vmul.f32 %v3795_v14, %v3354_v0 }
0x1bf9   : > { %4152 = vmatpush3.msra.mxu1 %v3371_v18  ;;  %v3370_v20 = vadd.f32 %v3796_v16, %v3362_v19 }
0x1bfa   : > { %4153 = vmatprep.subr.mxu1 %v4309_v8 }
0x1bfb   : > { %4154 = vmatpush3.msra.mxu1 %v3370_v20 }
0x1bfc   : > { %4156 = vmatmul.mubr.msk.f32.vlgmr.msra.gmra.mxu1 %vm914_vm2, %v3372_v21  ;;  %4158 = vmatprep.subr.mxu1 %v3451_v22 }
0x1bfd   : > { %4159 = vmatpush3.msra.mxu1 %v3451_v22  ;;  %4166 = vmatprep.mubr.msk.f32.mxu1 %vm684_vm0, %v3370_v20 }
0x1bfe   : > { %4160 = vmatprep.subr.mxu1 %v3450_v23 }
0x1bff   : > { %4161 = vmatpush3.msra.mxu1 %v3450_v23 }
0x1c00   : > { %4162 = vmatprep.subr.mxu1 %v3449_v24 }
0x1c01   : > { %4163 = vmatpush3.msra.mxu1 %v3449_v24 }
0x1c02   : > { %4164 = vmatprep.subr.mxu1 %v3448_v25 }
0x1c03   : > { %4165 = vmatpush3.msra.mxu1 %v3448_v25 }
0x1c04   : > { %4167 = vmatmul.mubr.msk.f32.vlgmr.msra.gmra.mxu1 %vm684_vm0, %v3371_v18 }
0x1cbc   : > { %v3442_v26 = vpop.f32.mrf.mxu1 }
0x1cbd   : > { %3447 = vst.msk [vmem:[%s672_s28] sm:$0x3] %vm3446_vm6, %v3442_v26 }
0x1cbe   : > { %v4157_v27 = vpop.f32.mrf.mxu1 }
0x1cc4   : > { %v4168_v29 = vpop.f32.mrf.mxu1 }
0x1cc5   : > { %v3537_v30 = vadd.f32 %v4168_v29, %v3798_v28 }
0x1cc6   : > { %v3531_v35 = vpop.f32.mrf.mxu1 }
0x1cc7   : > { %v3532_v31 = vadd.f32 %v3798_v28, %v3531_v35  ;;  %3542 = vmax.xlane.f32.xlu1 %v3537_v30 }
0x1cc9   : > { %3540 = vmax.xlane.f32.xlu0 %v3532_v31 }
0x1d50   : > { %v3543_v32 = vpop.xlane.xlu1 %3542 }
0x1d51   : > { %v3545_v33 = vsub.f32 %v3537_v30, %v3543_v32 }
0x1d52   : > { %v3541_v34 = vpop.xlane.xlu0 %3540 }
0x1d53   : > { %v3548_v37 = vmul.f32 1.442695, %v3545_v33  ;;  %v3544_v39 = vsub.f32 %v3532_v31, %v3541_v34 }
0x1d55   : > { %4277 = vpow2.f32 %v3548_v37  ;;  %v3546_v42 = vmul.f32 1.442695, %v3544_v39 }
0x1d57   : > { %4279 = vpow2.f32 %v3546_v42 }
0x1d62   : > { %v4278_v46 = vpop.eup %4277 }
0x1d63   : > { %3552 = vadd.xlane.f32.xlu1 %v4278_v46 }
0x1d64   : > { %v4280_v47 = vpop.eup %4279 }
0x1d65   : > { %3550 = vadd.xlane.f32.xlu0 %v4280_v47 }
0x1dec   : > { %v3553_v38 = vpop.xlane.xlu1 %3552 }
0x1ded   : > { %4281 = vlog2.f32 %v3553_v38 }
0x1dee   : > { %v3551_v49 = vpop.xlane.xlu0 %3550 }
0x1def   : > { %4283 = vlog2.f32 %v3551_v49 }
0x1dfa   : > { %v4282_v36 = vpop.eup %4281 }
0x1dfb   : > { %v3557_v50 = vmul.f32 0.6931472, %v4282_v36 }
0x1dfc   : > { %v4284_v51 = vpop.eup %4283 }
0x1dfd   : > { %v3559_v52 = vadd.f32 %v3557_v50, %v3543_v32  ;;  %v3555_v53 = vmul.f32 0.6931472, %v4284_v51 }
0x1dff   : > { %v3561_v54 = vsub.f32 %v3537_v30, %v3559_v52  ;;  %v3558_v55 = vadd.f32 %v3555_v53, %v3541_v34 }
0x1e01   : > { %3563 = vst [vmem:[%s677_s30 + $0x8] sm:$0xff] %v3561_v54  ;;  %v3560_v56 = vsub.f32 %v3532_v31, %v3558_v55 }
0x1e03   : > { %3562 = vst [vmem:[%s677_s30] sm:$0xff] %v3560_v56 }
0x1e04 PF: > { %s31_s1 = sadd.s32 1, %s4293_s1  }
0x1e05   : > { %p28_p4 = scmp.ge.s32.totalorder %s31_s1, 4  }
0x1e07   :  { %30 = sbr.rel (!%p28_p4) target bundleno = 6 (0x6), region = 156 }

</bundles_post_ra>
